<compile_context>
chip_gen: v7x
topology: tpu7x:2x2x1
jax: 0.10.0
libtpu: 0.0.40
codegen_flags: <defaults>
</compile_context>

<pallas_src>
import functools

import jax
import jax.numpy as jnp
from jax.experimental import pallas as pl
from jax.experimental.pallas import tpu as pltpu


def _adigcn_kernel(adj_ref, adjt_ref, xaug_ref, side_ref, wcat_ref, bcat_ref,
                   y_ref, gate_ref, acc_out_ref, acc_in_ref, *,
                   d, tile_k, inv_tau, xaug_resident):
    k = pl.program_id(1)
    n_k = pl.num_programs(1)

    @pl.when(k == 0)
    def _init():
        acc_out_ref[...] = jnp.zeros_like(acc_out_ref)
        acc_in_ref[...] = jnp.zeros_like(acc_in_ref)

    # Aggregation RHS: this k-tile of [x | x@w_of^T | x@w_if^T] (bf16).
    if xaug_resident:
        start = pl.multiple_of(k * tile_k, tile_k)
        rhs = xaug_ref[pl.ds(start, tile_k), :]
    else:
        rhs = xaug_ref[...]

    # Two bf16 aggregation matmuls (adj and adj^T), f32 accumulation in VMEM.
    acc_out_ref[...] += jnp.dot(adj_ref[...], rhs,
                                preferred_element_type=jnp.float32)
    acc_in_ref[...] += jnp.dot(adjt_ref[...], rhs,
                               preferred_element_type=jnp.float32)

    @pl.when(k == n_k - 1)
    def _epilogue():
        acc_o = acc_out_ref[...]                # [TN, D+2]  adj   @ x_aug
        acc_i = acc_in_ref[...]                 # [TN, D+2]  adj^T @ x_aug
        side = side_ref[...]                    # [TN, D+6]

        # Degree-filter logits: the neighbor term rode through the MXU as two
        # extra RHS columns; (enc - x) @ w^T + b is the per-node offset.
        c_out = acc_o[:, d:d + 1] + side[:, d:d + 1]
        c_in = acc_i[:, d + 1:d + 2] + side[:, d + 1:d + 2]

        # TODO(synk): tau_softmax is undefined in the source snippet; modeled
        # as a temperature softmax. 2-class softmax == sigmoid, computed in
        # the numerically stable exp(-|delta|) form with an EUP reciprocal.
        delta = (c_in - c_out) * inv_tau        # C_out = sigmoid(-delta)
        e = jnp.exp(-jnp.abs(delta))
        inv = pl.reciprocal(1.0 + e, approx=True)
        c_out_g = jnp.where(delta >= 0.0, e * inv, inv)
        c_in_g = 1.0 - c_out_g

        # Per-node mask affine: C * mask + mask_bias.
        c_out_g = c_out_g * side[:, d + 2:d + 3] + side[:, d + 3:d + 4]
        c_in_g = c_in_g * side[:, d + 4:d + 5] + side[:, d + 5:d + 6]

        # Gated projections: gates applied AFTER the matmuls (row-scale
        # distributivity), bf16 operands, f32 accumulation. alpha is folded
        # into w_cat[2D:3D] / b_cat[2].
        y = (c_out_g * jnp.dot(acc_o[:, :d].astype(jnp.bfloat16),
                               wcat_ref[0:d, :],
                               preferred_element_type=jnp.float32)
             + c_in_g * jnp.dot(acc_i[:, :d].astype(jnp.bfloat16),
                                wcat_ref[d:2 * d, :],
                                preferred_element_type=jnp.float32)
             + jnp.dot(side[:, :d].astype(jnp.bfloat16),
                       wcat_ref[2 * d:3 * d, :],
                       preferred_element_type=jnp.float32))
        y = (y + c_out_g * bcat_ref[0:1, :] + c_in_g * bcat_ref[1:2, :]
             + bcat_ref[2:3, :])

        # Two lane-aligned outputs, plain slice stores (no lane-offset concat).
        y_ref[...] = y
        gate_ref[:, 0:1] = c_out_g
        gate_ref[:, 1:2] = c_in_g


def _default_tiles(n):
    tile_n = 128
    while tile_n > 8 and (n % tile_n != 0 or n // tile_n < 2):
        tile_n //= 2
    if n <= 2048:
        tile_k = n
    else:
        tile_k = 2048
        while tile_k > 128 and n % tile_k != 0:
            tile_k //= 2
        if n % tile_k != 0:
            tile_k = n
    return tile_n, tile_k


def adigcn_forward(adj_norm, adj_t_norm, x, enc_out, enc_in, params, masks,
                   *, alpha, tau=1.0, tile_n=None, tile_k=None):
    N, D = x.shape
    O = params["w_src"].shape[1]
    dn, dk = _default_tiles(N)
    tile_n = dn if tile_n is None else tile_n
    tile_k = dk if tile_k is None else tile_k
    assert N % tile_n == 0 and N % tile_k == 0
    assert tile_n % 8 == 0 and (tile_k % 128 == 0 or tile_k == N)

    # Dominant HBM stream: normalized adjacency in bf16. Callers should
    # pre-cast / cache these across forward calls (the module caches adj_norm).
    # TODO(synk): per-generation narrowing (fp8 on v6e/v7x, int8 on v5e) of the
    # adjacency stream, once quantization error is validated against tolerance.
    adj_bf = adj_norm if adj_norm.dtype == jnp.bfloat16 else adj_norm.astype(jnp.bfloat16)
    adjt_bf = adj_t_norm if adj_t_norm.dtype == jnp.bfloat16 else adj_t_norm.astype(jnp.bfloat16)

    w_of = params["w_out_filter"]                 # [1, D]
    w_if = params["w_in_filter"]                  # [1, D]

    # Per-node filter offsets (non-neighbor part of the degree filter).
    off_out = (enc_out - x) @ w_of.T + params["b_out_filter"]     # [N, 1]
    off_in = (enc_in - x) @ w_if.T + params["b_in_filter"]        # [N, 1]

    # Augmented aggregation RHS (bf16): extra columns carry the filter terms
    # through the adjacency matmul: adj @ (x @ w^T) == (adj @ x) @ w^T.
    x_aug = jnp.concatenate([x, x @ w_of.T, x @ w_if.T],
                            axis=1).astype(jnp.bfloat16)          # [N, D+2]

    # All per-node side data in ONE f32 stream: [x | off_out | off_in | masks].
    col = lambda v: v.reshape(N, 1).astype(jnp.float32)
    side = jnp.concatenate(
        [x.astype(jnp.float32), off_out.astype(jnp.float32),
         off_in.astype(jnp.float32),
         col(masks["out_deg_mask"]), col(masks["out_deg_mask_bias"]),
         col(masks["in_deg_mask"]), col(masks["in_deg_mask_bias"])],
        axis=1)                                                   # [N, D+6]

    # Consolidated projection weights / biases (alpha folded in, bf16 weights).
    w_cat = jnp.concatenate(
        [params["w_src"], params["w_dst"], alpha * params["w_fc"]],
        axis=0).astype(jnp.bfloat16)                              # [3D, O]
    b_cat = jnp.concatenate(
        [params["b_src"], params["b_dst"], alpha * params["b_fc"]],
        axis=0).astype(jnp.float32)                               # [3, O]

    # x_aug stays VMEM-resident (fetched once) unless it is too large.
    xaug_resident = 2 * N * (D + 2) * 2 <= (16 << 20)
    if xaug_resident:
        xaug_spec = pl.BlockSpec((N, D + 2), lambda i, k: (0, 0))
    else:
        xaug_spec = pl.BlockSpec((tile_k, D + 2), lambda i, k: (k, 0))

    in_specs = [
        pl.BlockSpec((tile_n, tile_k), lambda i, k: (i, k)),      # adj
        pl.BlockSpec((tile_n, tile_k), lambda i, k: (i, k)),      # adj^T
        xaug_spec,                                                # x_aug
        pl.BlockSpec((tile_n, D + 6), lambda i, k: (i, 0)),       # side rows
        pl.BlockSpec((3 * D, O), lambda i, k: (0, 0)),            # w_cat
        pl.BlockSpec((3, O), lambda i, k: (0, 0)),                # b_cat
    ]
    out_specs = [
        pl.BlockSpec((tile_n, O), lambda i, k: (i, 0)),           # y
        pl.BlockSpec((tile_n, 2), lambda i, k: (i, 0)),           # gates
    ]
    out_shape = [
        jax.ShapeDtypeStruct((N, O), jnp.float32),
        jax.ShapeDtypeStruct((N, 2), jnp.float32),
    ]

    # Explicit VMEM budget (v7x: 64 MiB physical / 32 MiB default scoped).
    xaug_bytes = 2 * N * (D + 2) * 2 if xaug_resident else 2 * tile_k * (D + 2) * 2
    vmem_need = (2 * 2 * tile_n * tile_k * 2      # adj + adj^T, double-buffered
                 + xaug_bytes
                 + 2 * tile_n * (D + 6) * 4       # side rows
                 + 2 * (3 * D * O * 2 + 3 * O * 4)
                 + 2 * tile_n * (O + 2) * 4       # outputs
                 + 2 * tile_n * (D + 2) * 4)      # f32 accumulators
    vmem_limit = max(32 << 20, min(int(1.5 * vmem_need) + (2 << 20), 48 << 20))

    kernel = functools.partial(_adigcn_kernel, d=D, tile_k=tile_k,
                               inv_tau=1.0 / float(tau),
                               xaug_resident=xaug_resident)
    # TODO(synk): for sparse graphs, a PrefetchScalarGridSpec nonzero-block flag
    # could remap zero adjacency tiles (skip DMA + MXU) — not needed here.
    y, gates = pl.pallas_call(
        kernel,
        grid=(N // tile_n, N // tile_k),
        in_specs=in_specs,
        out_specs=out_specs,
        out_shape=out_shape,
        scratch_shapes=[pltpu.VMEM((tile_n, D + 2), jnp.float32),
                        pltpu.VMEM((tile_n, D + 2), jnp.float32)],
        compiler_params=pltpu.CompilerParams(
            dimension_semantics=("parallel", "arbitrary"),
            vmem_limit_bytes=vmem_limit),
    )(adj_bf, adjt_bf, x_aug, side, w_cat, b_cat)

    c_out = gates[:, 0:1]
    c_in = gates[:, 1:2]
    return y, (c_in, c_out)


# --------------------------- glue (plain JAX) -------------------------------

def directed_norm(A):
    """D_out^{-1/2} A D_in^{-1/2}  (get_norm_adj(adj, norm='dir'))."""
    out_deg = A.sum(axis=1)
    in_deg = A.sum(axis=0)
    out_inv_sqrt = jnp.where(out_deg > 0, 1.0 / jnp.sqrt(out_deg), 0.0)
    in_inv_sqrt = jnp.where(in_deg > 0, 1.0 / jnp.sqrt(in_deg), 0.0)
    return out_inv_sqrt[:, None] * A * in_inv_sqrt[None, :]


def reference_forward(adj_norm, adj_t_norm, x, enc_out, enc_in, params, masks,
                      alpha, tau):
    out_nei = adj_norm @ x
    in_nei = adj_t_norm @ x
    c_out = (out_nei - x + enc_out) @ params["w_out_filter"].T + params["b_out_filter"]
    c_in = (in_nei - x + enc_in) @ params["w_in_filter"].T + params["b_in_filter"]
    logits = jnp.concatenate([c_out, c_in], axis=1) / tau
    C = jax.nn.softmax(logits, axis=1)
    C_out = C[:, 0:1] * masks["out_deg_mask"] + masks["out_deg_mask_bias"]
    C_in = C[:, 1:2] * masks["in_deg_mask"] + masks["in_deg_mask_bias"]
    y = (C_out * (out_nei @ params["w_src"] + params["b_src"])
         + C_in * (in_nei @ params["w_dst"] + params["b_dst"])
         + alpha * (x @ params["w_fc"] + params["b_fc"]))
    return y, C_in, C_out


if __name__ == "__main__":
    N, D, O, E = 256, 32, 32, 1024   # nodes, input_dim, output_dim, num edges
    ALPHA, TAU = 0.5, 1.0

    key = jax.random.PRNGKey(0)
    keys = jax.random.split(key, 16)

    # graph
    row = jax.random.randint(keys[0], (E,), 0, N)
    col = jax.random.randint(keys[1], (E,), 0, N)
    A = jnp.zeros((N, N), jnp.float32).at[row, col].set(1.0)
    adj_norm = directed_norm(A)
    adj_t_norm = directed_norm(A.T)
    # Pre-cast / cache the bf16 adjacency ONCE (the module caches adj_norm
    # across forward calls) so the kernel wrapper never re-materializes it.
    adj_bf16 = adj_norm.astype(jnp.bfloat16)
    adj_t_bf16 = adj_t_norm.astype(jnp.bfloat16)

    # degrees + degree-encoding embeddings (padding_idx=0 -> row 0 zeroed)
    out_degree = A.sum(axis=1).astype(jnp.int32)
    in_degree = A.sum(axis=0).astype(jnp.int32)
    max_out = int(jnp.max(out_degree)) + 1
    max_in = int(jnp.max(in_degree)) + 1
    out_tbl = jax.random.normal(keys[2], (max_out, D), jnp.float32) * 0.1
    in_tbl = jax.random.normal(keys[3], (max_in, D), jnp.float32) * 0.1
    out_tbl = out_tbl.at[0].set(0.0)
    in_tbl = in_tbl.at[0].set(0.0)
    enc_out = out_tbl[out_degree]          # out_deg_enc(out_degree)
    enc_in = in_tbl[in_degree]             # in_deg_enc(in_degree)

    # node features
    x = jax.random.normal(keys[4], (N, D), jnp.float32)

    # deterministic parameter init (Linear weights stored as [D_in, D_out])
    s = 1.0 / jnp.sqrt(jnp.float32(D))
    params = {
        "w_src": jax.random.normal(keys[5], (D, O), jnp.float32) * s,
        "b_src": jax.random.normal(keys[6], (1, O), jnp.float32) * s,
        "w_dst": jax.random.normal(keys[7], (D, O), jnp.float32) * s,
        "b_dst": jax.random.normal(keys[8], (1, O), jnp.float32) * s,
        "w_fc": jax.random.normal(keys[9], (D, O), jnp.float32) * s,
        "b_fc": jax.random.normal(keys[10], (1, O), jnp.float32) * s,
        "w_out_filter": jax.random.normal(keys[11], (1, D), jnp.float32) * s,
        "b_out_filter": jax.random.normal(keys[12], (1, 1), jnp.float32) * s,
        "w_in_filter": jax.random.normal(keys[13], (1, D), jnp.float32) * s,
        "b_in_filter": jax.random.normal(keys[14], (1, 1), jnp.float32) * s,
    }

    # mask dict (synthetic but deterministic): gate nodes with zero degree
    masks = {
        "out_deg_mask": (out_degree > 0).astype(jnp.float32)[:, None],
        "out_deg_mask_bias": 0.5 * (out_degree == 0).astype(jnp.float32)[:, None],
        "in_deg_mask": (in_degree > 0).astype(jnp.float32)[:, None],
        "in_deg_mask_bias": 0.5 * (in_degree == 0).astype(jnp.float32)[:, None],
    }

    # grid (2, 2): exercises both the parallel node-tile axis and the
    # accumulating adjacency-column axis.
    out, (c_in, c_out) = adigcn_forward(adj_bf16, adj_t_bf16, x, enc_out,
                                        enc_in, params, masks,
                                        alpha=ALPHA, tau=TAU,
                                        tile_n=128, tile_k=128)
    jax.block_until_ready((out, c_in, c_out))

    ref_out, ref_cin, ref_cout = reference_forward(adj_norm, adj_t_norm, x,
                                                   enc_out, enc_in, params,
                                                   masks, ALPHA, TAU)
    # bf16 adjacency/x_aug aggregation + bf16 epilogue projections -> ~3e-2.
    assert jnp.allclose(out, ref_out, atol=3e-2, rtol=3e-2), "output mismatch"
    assert jnp.allclose(c_in, ref_cin, atol=3e-2, rtol=3e-2), "C_in mismatch"
    assert jnp.allclose(c_out, ref_cout, atol=3e-2, rtol=3e-2), "C_out mismatch"

    print("KERNEL_OK")
</pallas_src>

<mosaic_0001>
module attributes {stable_mosaic.version = 11 : i64} {
  func.func @_adigcn_kernel(%arg0: i32, %arg1: i32, %arg2: memref<128x128xbf16, #tpu.memory_space<vmem>>, %arg3: memref<128x128xbf16, #tpu.memory_space<vmem>>, %arg4: memref<256x34xbf16, #tpu.memory_space<vmem>>, %arg5: memref<128x38xf32, #tpu.memory_space<vmem>>, %arg6: memref<96x32xbf16, #tpu.memory_space<vmem>>, %arg7: memref<3x32xf32, #tpu.memory_space<vmem>>, %arg8: memref<128x32xf32, #tpu.memory_space<vmem>>, %arg9: memref<128x2xf32, #tpu.memory_space<vmem>>, %arg10: memref<128x34xf32, #tpu.memory_space<vmem>>, %arg11: memref<128x34xf32, #tpu.memory_space<vmem>>) attributes {dimension_semantics = [#tpu.dimension_semantics<parallel>, #tpu.dimension_semantics<arbitrary>], iteration_bounds = array<i64: 2, 2>, scalar_prefetch = 0 : i64, scratch_operands = 2 : i64, tpu.core_type = #tpu.core_type<tc>, window_params = [{transform_indices = @transform_0, window_bounds = array<i64: 128, 128>}, {transform_indices = @transform_1, window_bounds = array<i64: 128, 128>}, {pipeline_mode = #tpu.pipeline_mode<synchronous>, transform_indices = @transform_2, window_bounds = array<i64: 256, 34>}, {transform_indices = @transform_3, window_bounds = array<i64: 128, 38>}, {pipeline_mode = #tpu.pipeline_mode<synchronous>, transform_indices = @transform_4, window_bounds = array<i64: 96, 32>}, {pipeline_mode = #tpu.pipeline_mode<synchronous>, transform_indices = @transform_5, window_bounds = array<i64: 3, 32>}, {transform_indices = @transform_6, window_bounds = array<i64: 128, 32>}, {transform_indices = @transform_7, window_bounds = array<i64: 128, 2>}]} {
    %c0_i32 = arith.constant 0 : i32
    %0 = arith.cmpi eq, %arg1, %c0_i32 : i32
    %1 = arith.extui %0 : i1 to i32
    %c0_i32_0 = arith.constant 0 : i32
    %2 = arith.cmpi ne, %1, %c0_i32_0 : i32
    scf.if %2 {
      %cst_15 = arith.constant 0.000000e+00 : f32
      %20 = vector.broadcast %cst_15 : f32 to vector<128x34xf32>
      %c0_16 = arith.constant 0 : index
      %c0_17 = arith.constant 0 : index
      %21 = vector.load %arg10[%c0_16, %c0_17] : memref<128x34xf32, #tpu.memory_space<vmem>>, vector<128x34xf32>
      tpu.vector_store %arg10[%c0_16, %c0_17], %20 {strides = array<i32>} : memref<128x34xf32, #tpu.memory_space<vmem>>, vector<128x34xf32>,
      %cst_18 = arith.constant 0.000000e+00 : f32
      %22 = vector.broadcast %cst_18 : f32 to vector<128x34xf32>
      %c0_19 = arith.constant 0 : index
      %c0_20 = arith.constant 0 : index
      %23 = vector.load %arg11[%c0_19, %c0_20] : memref<128x34xf32, #tpu.memory_space<vmem>>, vector<128x34xf32>
      tpu.vector_store %arg11[%c0_19, %c0_20], %22 {strides = array<i32>} : memref<128x34xf32, #tpu.memory_space<vmem>>, vector<128x34xf32>,
    } else {
    }
    %c128_i32 = arith.constant 128 : i32
    %3 = arith.muli %arg1, %c128_i32 : i32
    %4 = tpu.assume_multiple %3, 128 : i32
    %5 = arith.index_cast %4 : i32 to index
    %c0 = arith.constant 0 : index
    %6 = vector.load %arg4[%5, %c0] : memref<256x34xbf16, #tpu.memory_space<vmem>>, vector<128x34xbf16>
    %c0_1 = arith.constant 0 : index
    %c0_2 = arith.constant 0 : index
    %7 = vector.load %arg10[%c0_1, %c0_2] : memref<128x34xf32, #tpu.memory_space<vmem>>, vector<128x34xf32>
    %c0_3 = arith.constant 0 : index
    %c0_4 = arith.constant 0 : index
    %8 = vector.load %arg2[%c0_3, %c0_4] : memref<128x128xbf16, #tpu.memory_space<vmem>>, vector<128x128xbf16>
    %cst = arith.constant dense<0.000000e+00> : vector<128x34xf32>
    %9 = tpu.matmul %8, %6, %cst {dimension_numbers = #tpu.dot_dimension_numbers<[1], [0], [0], [1], [0, 0, 1, 1], [], []>} : vector<128x128xbf16>, vector<128x34xbf16>, vector<128x34xf32> -> vector<128x34xf32>
    %10 = arith.addf %7, %9 : vector<128x34xf32>
    %c0_5 = arith.constant 0 : index
    %c0_6 = arith.constant 0 : index
    %11 = vector.load %arg10[%c0_5, %c0_6] : memref<128x34xf32, #tpu.memory_space<vmem>>, vector<128x34xf32>
    tpu.vector_store %arg10[%c0_5, %c0_6], %10 {strides = array<i32>} : memref<128x34xf32, #tpu.memory_space<vmem>>, vector<128x34xf32>,
    %c0_7 = arith.constant 0 : index
    %c0_8 = arith.constant 0 : index
    %12 = vector.load %arg11[%c0_7, %c0_8] : memref<128x34xf32, #tpu.memory_space<vmem>>, vector<128x34xf32>
    %c0_9 = arith.constant 0 : index
    %c0_10 = arith.constant 0 : index
    %13 = vector.load %arg3[%c0_9, %c0_10] : memref<128x128xbf16, #tpu.memory_space<vmem>>, vector<128x128xbf16>
    %cst_11 = arith.constant dense<0.000000e+00> : vector<128x34xf32>
    %14 = tpu.matmul %13, %6, %cst_11 {dimension_numbers = #tpu.dot_dimension_numbers<[1], [0], [0], [1], [0, 0, 1, 1], [], []>} : vector<128x128xbf16>, vector<128x34xbf16>, vector<128x34xf32> -> vector<128x34xf32>
    %15 = arith.addf %12, %14 : vector<128x34xf32>
    %c0_12 = arith.constant 0 : index
    %c0_13 = arith.constant 0 : index
    %16 = vector.load %arg11[%c0_12, %c0_13] : memref<128x34xf32, #tpu.memory_space<vmem>>, vector<128x34xf32>
    tpu.vector_store %arg11[%c0_12, %c0_13], %15 {strides = array<i32>} : memref<128x34xf32, #tpu.memory_space<vmem>>, vector<128x34xf32>,
    %c1_i32 = arith.constant 1 : i32
    %17 = arith.cmpi eq, %arg1, %c1_i32 : i32
    %18 = arith.extui %17 : i1 to i32
    %c0_i32_14 = arith.constant 0 : i32
    %19 = arith.cmpi ne, %18, %c0_i32_14 : i32
    scf.if %19 {
      %c0_15 = arith.constant 0 : index
      %c0_16 = arith.constant 0 : index
      %20 = vector.load %arg10[%c0_15, %c0_16] : memref<128x34xf32, #tpu.memory_space<vmem>>, vector<128x34xf32>
      %c0_17 = arith.constant 0 : index
      %c0_18 = arith.constant 0 : index
      %21 = vector.load %arg11[%c0_17, %c0_18] : memref<128x34xf32, #tpu.memory_space<vmem>>, vector<128x34xf32>
      %c0_19 = arith.constant 0 : index
      %c0_20 = arith.constant 0 : index
      %22 = vector.load %arg5[%c0_19, %c0_20] : memref<128x38xf32, #tpu.memory_space<vmem>>, vector<128x38xf32>
      %23 = vector.extract_strided_slice %20 {offsets = [0, 32], sizes = [128, 1], strides = [1, 1]} : vector<128x34xf32> to vector<128x1xf32>
      %24 = vector.extract_strided_slice %22 {offsets = [0, 32], sizes = [128, 1], strides = [1, 1]} : vector<128x38xf32> to vector<128x1xf32>
      %25 = arith.addf %23, %24 : vector<128x1xf32>
      %26 = vector.extract_strided_slice %21 {offsets = [0, 33], sizes = [128, 1], strides = [1, 1]} : vector<128x34xf32> to vector<128x1xf32>
      %27 = vector.extract_strided_slice %22 {offsets = [0, 33], sizes = [128, 1], strides = [1, 1]} : vector<128x38xf32> to vector<128x1xf32>
      %28 = arith.addf %26, %27 : vector<128x1xf32>
      %29 = arith.subf %28, %25 : vector<128x1xf32>
      %cst_21 = arith.constant 1.000000e+00 : f32
      %30 = vector.broadcast %cst_21 : f32 to vector<128x1xf32>
      %31 = arith.mulf %29, %30 : vector<128x1xf32>
      %32 = math.absf %31 : vector<128x1xf32>
      %cst_22 = arith.constant 0.000000e+00 : f32
      %33 = vector.broadcast %cst_22 : f32 to vector<128x1xf32>
      %34 = arith.subf %33, %32 : vector<128x1xf32>
      %35 = math.exp %34 : vector<128x1xf32>
      %cst_23 = arith.constant 1.000000e+00 : f32
      %36 = vector.broadcast %cst_23 : f32 to vector<128x1xf32>
      %37 = arith.addf %36, %35 : vector<128x1xf32>
      %38 = tpu.reciprocal %37 {approx = true} : vector<128x1xf32> -> vector<128x1xf32>
      %cst_24 = arith.constant 0.000000e+00 : f32
      %39 = vector.broadcast %cst_24 : f32 to vector<128x1xf32>
      %40 = arith.cmpf oge, %31, %39 : vector<128x1xf32>
      %41 = arith.mulf %35, %38 : vector<128x1xf32>
      %42 = arith.select %40, %41, %38 : vector<128x1xi1>, vector<128x1xf32>
      %cst_25 = arith.constant 1.000000e+00 : f32
      %43 = vector.broadcast %cst_25 : f32 to vector<128x1xf32>
      %44 = arith.subf %43, %42 : vector<128x1xf32>
      %45 = vector.extract_strided_slice %22 {offsets = [0, 34], sizes = [128, 1], strides = [1, 1]} : vector<128x38xf32> to vector<128x1xf32>
      %46 = arith.mulf %42, %45 : vector<128x1xf32>
      %47 = vector.extract_strided_slice %22 {offsets = [0, 35], sizes = [128, 1], strides = [1, 1]} : vector<128x38xf32> to vector<128x1xf32>
      %48 = arith.addf %46, %47 : vector<128x1xf32>
      %49 = vector.extract_strided_slice %22 {offsets = [0, 36], sizes = [128, 1], strides = [1, 1]} : vector<128x38xf32> to vector<128x1xf32>
      %50 = arith.mulf %44, %49 : vector<128x1xf32>
      %51 = vector.extract_strided_slice %22 {offsets = [0, 37], sizes = [128, 1], strides = [1, 1]} : vector<128x38xf32> to vector<128x1xf32>
      %52 = arith.addf %50, %51 : vector<128x1xf32>
      %53 = vector.extract_strided_slice %20 {offsets = [0, 0], sizes = [128, 32], strides = [1, 1]} : vector<128x34xf32> to vector<128x32xf32>
      %54 = arith.truncf %53 : vector<128x32xf32> to vector<128x32xbf16>
      %c0_26 = arith.constant 0 : index
      %c0_27 = arith.constant 0 : index
      %55 = vector.load %arg6[%c0_26, %c0_27] : memref<96x32xbf16, #tpu.memory_space<vmem>>, vector<32x32xbf16>
      %cst_28 = arith.constant dense<0.000000e+00> : vector<128x32xf32>
      %56 = tpu.matmul %54, %55, %cst_28 {dimension_numbers = #tpu.dot_dimension_numbers<[1], [0], [0], [1], [0, 0, 1, 1], [], []>} : vector<128x32xbf16>, vector<32x32xbf16>, vector<128x32xf32> -> vector<128x32xf32>
      %57 = vector.broadcast %48 : vector<128x1xf32> to vector<128x32xf32>
      %58 = arith.mulf %57, %56 : vector<128x32xf32>
      %59 = vector.extract_strided_slice %21 {offsets = [0, 0], sizes = [128, 32], strides = [1, 1]} : vector<128x34xf32> to vector<128x32xf32>
      %60 = arith.truncf %59 : vector<128x32xf32> to vector<128x32xbf16>
      %c32 = arith.constant 32 : index
      %c0_29 = arith.constant 0 : index
      %61 = vector.load %arg6[%c32, %c0_29] : memref<96x32xbf16, #tpu.memory_space<vmem>>, vector<32x32xbf16>
      %cst_30 = arith.constant dense<0.000000e+00> : vector<128x32xf32>
      %62 = tpu.matmul %60, %61, %cst_30 {dimension_numbers = #tpu.dot_dimension_numbers<[1], [0], [0], [1], [0, 0, 1, 1], [], []>} : vector<128x32xbf16>, vector<32x32xbf16>, vector<128x32xf32> -> vector<128x32xf32>
      %63 = vector.broadcast %52 : vector<128x1xf32> to vector<128x32xf32>
      %64 = arith.mulf %63, %62 : vector<128x32xf32>
      %65 = arith.addf %58, %64 : vector<128x32xf32>
      %66 = vector.extract_strided_slice %22 {offsets = [0, 0], sizes = [128, 32], strides = [1, 1]} : vector<128x38xf32> to vector<128x32xf32>
      %67 = arith.truncf %66 : vector<128x32xf32> to vector<128x32xbf16>
      %c64 = arith.constant 64 : index
      %c0_31 = arith.constant 0 : index
      %68 = vector.load %arg6[%c64, %c0_31] : memref<96x32xbf16, #tpu.memory_space<vmem>>, vector<32x32xbf16>
      %cst_32 = arith.constant dense<0.000000e+00> : vector<128x32xf32>
      %69 = tpu.matmul %67, %68, %cst_32 {dimension_numbers = #tpu.dot_dimension_numbers<[1], [0], [0], [1], [0, 0, 1, 1], [], []>} : vector<128x32xbf16>, vector<32x32xbf16>, vector<128x32xf32> -> vector<128x32xf32>
      %70 = arith.addf %65, %69 : vector<128x32xf32>
      %c0_33 = arith.constant 0 : index
      %c0_34 = arith.constant 0 : index
      %71 = vector.load %arg7[%c0_33, %c0_34] : memref<3x32xf32, #tpu.memory_space<vmem>>, vector<1x32xf32>
      %72 = vector.broadcast %48 : vector<128x1xf32> to vector<128x32xf32>
      %73 = vector.broadcast %71 : vector<1x32xf32> to vector<128x32xf32>
      %74 = arith.mulf %72, %73 : vector<128x32xf32>
      %75 = arith.addf %70, %74 : vector<128x32xf32>
      %c1 = arith.constant 1 : index
      %c0_35 = arith.constant 0 : index
      %76 = vector.load %arg7[%c1, %c0_35] : memref<3x32xf32, #tpu.memory_space<vmem>>, vector<1x32xf32>
      %77 = vector.broadcast %52 : vector<128x1xf32> to vector<128x32xf32>
      %78 = vector.broadcast %76 : vector<1x32xf32> to vector<128x32xf32>
      %79 = arith.mulf %77, %78 : vector<128x32xf32>
      %80 = arith.addf %75, %79 : vector<128x32xf32>
      %c2 = arith.constant 2 : index
      %c0_36 = arith.constant 0 : index
      %81 = vector.load %arg7[%c2, %c0_36] : memref<3x32xf32, #tpu.memory_space<vmem>>, vector<1x32xf32>
      %82 = vector.broadcast %81 : vector<1x32xf32> to vector<128x32xf32>
      %83 = arith.addf %80, %82 : vector<128x32xf32>
      %c0_37 = arith.constant 0 : index
      %c0_38 = arith.constant 0 : index
      %84 = vector.load %arg8[%c0_37, %c0_38] : memref<128x32xf32, #tpu.memory_space<vmem>>, vector<128x32xf32>
      tpu.vector_store %arg8[%c0_37, %c0_38], %83 {strides = array<i32>} : memref<128x32xf32, #tpu.memory_space<vmem>>, vector<128x32xf32>,
      %c0_39 = arith.constant 0 : index
      %c0_40 = arith.constant 0 : index
      %85 = vector.load %arg9[%c0_39, %c0_40] : memref<128x2xf32, #tpu.memory_space<vmem>>, vector<128x1xf32>
      tpu.vector_store %arg9[%c0_39, %c0_40], %48 {strides = array<i32>} : memref<128x2xf32, #tpu.memory_space<vmem>>, vector<128x1xf32>,
      %c0_41 = arith.constant 0 : index
      %c1_42 = arith.constant 1 : index
      %86 = vector.load %arg9[%c0_41, %c1_42] : memref<128x2xf32, #tpu.memory_space<vmem>>, vector<128x1xf32>
      tpu.vector_store %arg9[%c0_41, %c1_42], %52 {strides = array<i32>} : memref<128x2xf32, #tpu.memory_space<vmem>>, vector<128x1xf32>,
    } else {
    }
    return
  }
  func.func @transform_0(%arg0: i32, %arg1: i32) -> (i32, i32) {
    %c0_i32 = arith.constant 0 : i32
    return %arg0, %arg1 : i32, i32
  }
  func.func @transform_1(%arg0: i32, %arg1: i32) -> (i32, i32) {
    %c0_i32 = arith.constant 0 : i32
    return %arg0, %arg1 : i32, i32
  }
  func.func @transform_2(%arg0: i32, %arg1: i32) -> (i32, i32) {
    %c0_i32 = arith.constant 0 : i32
    %c0_i32_0 = arith.constant 0 : i32
    %c0_i32_1 = arith.constant 0 : i32
    return %c0_i32, %c0_i32_0 : i32, i32
  }
  func.func @transform_3(%arg0: i32, %arg1: i32) -> (i32, i32) {
    %c0_i32 = arith.constant 0 : i32
    %c0_i32_0 = arith.constant 0 : i32
    return %arg0, %c0_i32 : i32, i32
  }
  func.func @transform_4(%arg0: i32, %arg1: i32) -> (i32, i32) {
    %c0_i32 = arith.constant 0 : i32
    %c0_i32_0 = arith.constant 0 : i32
    %c0_i32_1 = arith.constant 0 : i32
    return %c0_i32, %c0_i32_0 : i32, i32
  }
  func.func @transform_5(%arg0: i32, %arg1: i32) -> (i32, i32) {
    %c0_i32 = arith.constant 0 : i32
    %c0_i32_0 = arith.constant 0 : i32
    %c0_i32_1 = arith.constant 0 : i32
    return %c0_i32, %c0_i32_0 : i32, i32
  }
  func.func @transform_6(%arg0: i32, %arg1: i32) -> (i32, i32) {
    %c0_i32 = arith.constant 0 : i32
    %c0_i32_0 = arith.constant 0 : i32
    return %arg0, %c0_i32 : i32, i32
  }
  func.func @transform_7(%arg0: i32, %arg1: i32) -> (i32, i32) {
    %c0_i32 = arith.constant 0 : i32
    %c0_i32_0 = arith.constant 0 : i32
    return %arg0, %c0_i32 : i32, i32
  }
}

</mosaic_0001>

<bundles_post_ra>
// kernel: tpu_custom_call.1
= control target key start
LH: loop header
LB: loop body
LE: loop exit
PB: predicated region body
PF: predicated region fallthrough
CT: control target
= control target key end

     0   :  { %s3271_s24 = smov 0   ;;  %s3273_s25 = smov 0   ;;  %s4575_s0 = inlined_call_operand.vmem [shape: bf16[256,256], index: 0, kind: input, shape index: {}]   ;;  %s4576_s1 = inlined_call_operand.vmem [shape: bf16[256,256], index: 1, kind: input, shape index: {}]   ;;  %s4577_s2 = inlined_call_operand.vmem [shape: bf16[256,34], index: 2, kind: input, shape index: {}]   ;;  %s4578_s3 = inlined_call_operand.vmem [shape: f32[256,38], index: 3, kind: input, shape index: {}]   ;;  %s4579_s4 = inlined_call_operand.vmem [shape: bf16[96,32], index: 4, kind: input, shape index: {}]   ;;  %s4580_s5 = inlined_call_operand.vmem [shape: f32[3,32], index: 5, kind: input, shape index: {}]   ;;  %s4581_s6 = inlined_call_operand.vmem [shape: f32[256,32], index: 6, kind: output, shape index: {0}]   ;;  %s4582_s7 = inlined_call_operand.vmem [shape: f32[256,2], index: 7, kind: output, shape index: {1}]  }
   0x1   :  { %s3275_s26 = smov 0   ;;  %s3277_s27 = smov 0  }
   0x2   :  { %s3279_s28 = smov 0   ;;  %s3281_s29 = smov 0  }
   0x3   :  { %s3283_s30 = smov 0  }
   0x4 LB: > { %s27_s8 = sadd.s32 1, %s3212_s28  ;;  %s30_s9 = sadd.s32 1, %s3216_s29  ;;  %s3220_s30 = sphi %s3283_s30, %s18_s30   ;;  %s3216_s29 = sphi %s3281_s29, %s4629_s29   ;;  %s3212_s28 = sphi %s3279_s28, %s4628_s28   ;;  %s3208_s27 = sphi %s3277_s27, %s4627_s27   ;;  %s3204_s26 = sphi %s3275_s26, %s4626_s26   ;;  %s3200_s25 = sphi %s3273_s25, %s4625_s25   ;;  %s3196_s24 = sphi %s3271_s24, %s4624_s24  }
   0x5   : > { %p28_p0 = scmp.ge.s32.totalorder %s27_s8, 2  ;;  %p46_p1 = scmp.ne.s32.totalorder %s3200_s25, %s3196_s24 }
   0x6   : > { %p47_p2 = scmp.eq.s32.totalorder %s3220_s30, 0  ;;  %s39_s14 = sadd.s32 1, %s3200_s25 }
   0x7   : > { %s4631_s8 = smov (%p28_p0, %s27_s8), 0  ;;  %s4633_s9 = smov (!%p28_p0, %s30_s9), %s3216_s29 }
   0x8   : > { %p3314_p3 = por %p47_p2, %p46_p1  ;;  %p32_p4 = scmp.ge.s32.totalorder %s4633_s9, 2 }
   0x9   : > { %s35_s11 = ssub.s32 %s3212_s28, %s4631_s8  ;;  %p2732_p6 = scmp.ge.s32.totalorder %s3220_s30, 4 }
   0xa   : > { %s4635_s9 = smov (%p32_p4, %s4633_s9), 0 }
   0xb   : > { %s34_s12 = ssub.s32 %s3216_s29, %s4635_s9  ;;  %250 = sbr.rel (%p2732_p6) target bundleno = 50 (0x32), region = 28 }
   0xc   : > { %s36_s13 = sor.u32 %s35_s11, %s34_s12 }
   0xd   : > { %p37_p5 = scmp.eq.s32.totalorder %s36_s13, 0 }
   0xf   : > { %s3326_s15 = scalar_select %p37_p5, %s3200_s25, %s39_s14  }
  0x12   : > { %253 = sbr.rel (!%p3314_p3) target bundleno = 34 (0x22), region = 32  ;;  %s255_s16 = sand.u32 (%p3314_p3), 1, %s3200_s25  }
  0x13   : > { %s2813_s17 = sshll.u32 (%p3314_p3), %s3216_s29, 5  ;;  %s2733_s18 = sshll.u32 (%p3314_p3), %s255_s16, 6 }
  0x14   : > { %s260_s19 = sadd.s32 (%p3314_p3), %s3212_s28, %s2813_s17  ;;  %s257_s11 = scalar_lea.vmem (%p3314_p3), [#allocation4], %s2733_s18 }
  0x15   : > { %s2736_s20 = sshll.u32 (%p3314_p3), %s260_s19, 2 }
  0x16   : > { %s3337_s23 = scalar_lea.vmem (%p3314_p3), %s4575_s0, %s2736_s20 }
  0x17   : > { %v278_v0 = vld [vmem:[%s3337_s23] sm:$0xf] (%p3314_p3)  ;;  %v280_v1 = vld [vmem:[%s3337_s23 + $0x8] sm:$0xf] (%p3314_p3)  ;;  %v282_v2 = vld [vmem:[%s3337_s23 + $0x10] sm:$0xf] (%p3314_p3) }
  0x18   : > { %279 = vst [vmem:[%s257_s11] sm:$0xf] (%p3314_p3), %v278_v0  ;;  %281 = vst [vmem:[%s257_s11 + $0x4] sm:$0xf] (%p3314_p3), %v280_v1  ;;  %v284_v3 = vld [vmem:[%s3337_s23 + $0x18] sm:$0xf] (%p3314_p3) }
  0x19   : > { %283 = vst [vmem:[%s257_s11 + $0x8] sm:$0xf] %v282_v2  ;;  %v286_v4 = vld [vmem:[%s3337_s23 + $0x20] sm:$0xf]  ;;  %v288_v5 = vld [vmem:[%s3337_s23 + $0x28] sm:$0xf] }
  0x1a   : > { %285 = vst [vmem:[%s257_s11 + $0xc] sm:$0xf] %v284_v3  ;;  %287 = vst [vmem:[%s257_s11 + $0x10] sm:$0xf] %v286_v4  ;;  %v290_v6 = vld [vmem:[%s3337_s23 + $0x30] sm:$0xf] }
  0x1b   : > { %289 = vst [vmem:[%s257_s11 + $0x14] sm:$0xf] %v288_v5  ;;  %v292_v7 = vld [vmem:[%s3337_s23 + $0x38] sm:$0xf]  ;;  %v294_v8 = vld [vmem:[%s3337_s23 + $0x40] sm:$0xf] }
  0x1c   : > { %291 = vst [vmem:[%s257_s11 + $0x18] sm:$0xf] %v290_v6  ;;  %293 = vst [vmem:[%s257_s11 + $0x1c] sm:$0xf] %v292_v7  ;;  %v296_v9 = vld [vmem:[%s3337_s23 + $0x48] sm:$0xf] }
  0x1d   : > { %295 = vst [vmem:[%s257_s11 + $0x20] sm:$0xf] %v294_v8  ;;  %v298_v10 = vld [vmem:[%s3337_s23 + $0x50] sm:$0xf]  ;;  %v300_v11 = vld [vmem:[%s3337_s23 + $0x58] sm:$0xf] }
  0x1e   : > { %297 = vst [vmem:[%s257_s11 + $0x24] sm:$0xf] %v296_v9  ;;  %299 = vst [vmem:[%s257_s11 + $0x28] sm:$0xf] %v298_v10  ;;  %v302_v12 = vld [vmem:[%s3337_s23 + $0x60] sm:$0xf] }
  0x1f   : > { %301 = vst [vmem:[%s257_s11 + $0x2c] sm:$0xf] %v300_v11  ;;  %v304_v13 = vld [vmem:[%s3337_s23 + $0x68] sm:$0xf]  ;;  %v306_v14 = vld [vmem:[%s3337_s23 + $0x70] sm:$0xf] }
  0x20   : > { %303 = vst [vmem:[%s257_s11 + $0x30] sm:$0xf] %v302_v12  ;;  %305 = vst [vmem:[%s257_s11 + $0x34] sm:$0xf] %v304_v13  ;;  %v308_v15 = vld [vmem:[%s3337_s23 + $0x78] sm:$0xf] }
  0x21   : > { %307 = vst [vmem:[%s257_s11 + $0x38] sm:$0xf] %v306_v14  ;;  %309 = vst [vmem:[%s257_s11 + $0x3c] sm:$0xf] %v308_v15 }
  0x22 PF: > { %364 = sbr.rel (!%p3314_p3) target bundleno = 50 (0x32), region = 73  ;;  %s366_s12 = sand.u32 (%p3314_p3), 1, %s3200_s25  }
  0x23   : > { %s2814_s13 = sshll.u32 (%p3314_p3), %s3216_s29, 5  ;;  %s2737_s14 = sshll.u32 (%p3314_p3), %s366_s12, 6 }
  0x24   : > { %s371_s16 = sadd.s32 (%p3314_p3), %s3212_s28, %s2814_s13  ;;  %s368_s10 = scalar_lea.vmem (%p3314_p3), [#allocation5], %s2737_s14 }
  0x25   : > { %s2740_s17 = sshll.u32 (%p3314_p3), %s371_s16, 2 }
  0x26   : > { %s3363_s20 = scalar_lea.vmem (%p3314_p3), %s4576_s1, %s2740_s17 }
  0x27   : > { %v389_v16 = vld [vmem:[%s3363_s20] sm:$0xf] (%p3314_p3)  ;;  %v391_v17 = vld [vmem:[%s3363_s20 + $0x8] sm:$0xf] (%p3314_p3)  ;;  %v393_v18 = vld [vmem:[%s3363_s20 + $0x10] sm:$0xf] (%p3314_p3) }
  0x28   : > { %390 = vst [vmem:[%s368_s10] sm:$0xf] (%p3314_p3), %v389_v16  ;;  %392 = vst [vmem:[%s368_s10 + $0x4] sm:$0xf] (%p3314_p3), %v391_v17  ;;  %v395_v19 = vld [vmem:[%s3363_s20 + $0x18] sm:$0xf] (%p3314_p3) }
  0x29   : > { %394 = vst [vmem:[%s368_s10 + $0x8] sm:$0xf] %v393_v18  ;;  %v397_v20 = vld [vmem:[%s3363_s20 + $0x20] sm:$0xf]  ;;  %v399_v21 = vld [vmem:[%s3363_s20 + $0x28] sm:$0xf] }
  0x2a   : > { %396 = vst [vmem:[%s368_s10 + $0xc] sm:$0xf] %v395_v19  ;;  %398 = vst [vmem:[%s368_s10 + $0x10] sm:$0xf] %v397_v20  ;;  %v401_v22 = vld [vmem:[%s3363_s20 + $0x30] sm:$0xf] }
  0x2b   : > { %400 = vst [vmem:[%s368_s10 + $0x14] sm:$0xf] %v399_v21  ;;  %v403_v23 = vld [vmem:[%s3363_s20 + $0x38] sm:$0xf]  ;;  %v405_v24 = vld [vmem:[%s3363_s20 + $0x40] sm:$0xf] }
  0x2c   : > { %402 = vst [vmem:[%s368_s10 + $0x18] sm:$0xf] %v401_v22  ;;  %404 = vst [vmem:[%s368_s10 + $0x1c] sm:$0xf] %v403_v23  ;;  %v407_v25 = vld [vmem:[%s3363_s20 + $0x48] sm:$0xf] }
  0x2d   : > { %406 = vst [vmem:[%s368_s10 + $0x20] sm:$0xf] %v405_v24  ;;  %v409_v26 = vld [vmem:[%s3363_s20 + $0x50] sm:$0xf]  ;;  %v411_v27 = vld [vmem:[%s3363_s20 + $0x58] sm:$0xf] }
  0x2e   : > { %408 = vst [vmem:[%s368_s10 + $0x24] sm:$0xf] %v407_v25  ;;  %410 = vst [vmem:[%s368_s10 + $0x28] sm:$0xf] %v409_v26  ;;  %v413_v28 = vld [vmem:[%s3363_s20 + $0x60] sm:$0xf] }
  0x2f   : > { %412 = vst [vmem:[%s368_s10 + $0x2c] sm:$0xf] %v411_v27  ;;  %v415_v29 = vld [vmem:[%s3363_s20 + $0x68] sm:$0xf]  ;;  %v417_v30 = vld [vmem:[%s3363_s20 + $0x70] sm:$0xf] }
  0x30   : > { %414 = vst [vmem:[%s368_s10 + $0x30] sm:$0xf] %v413_v28  ;;  %416 = vst [vmem:[%s368_s10 + $0x34] sm:$0xf] %v415_v29  ;;  %v419_v31 = vld [vmem:[%s3363_s20 + $0x78] sm:$0xf] }
  0x31   : > { %418 = vst [vmem:[%s368_s10 + $0x38] sm:$0xf] %v417_v30  ;;  %420 = vst [vmem:[%s368_s10 + $0x3c] sm:$0xf] %v419_v31 }
  0x32 PF: > { %p2741_p7 = scmp.ge.s32.totalorder %s3220_s30, 1  ;;  %p483_p8 = scmp.lt.s32.totalorder %s3220_s30, 5 }
  0x34   : > { %p484_p9 = pnand %p2741_p7, %p483_p8 }
  0x35   : > { %s490_s21 = sand.u32 (!%p484_p9), 1, %s3196_s24   ;;  %s2744_s22 = sshll.u32 (!%p484_p9), %s3208_s27, 4 }
  0x36   : > { %487 = sbr.rel (%p484_p9) target bundleno = 828 (0x33c), region = 118  ;;  %s2742_s23 = sshll.u32 (!%p484_p9), %s490_s21, 6 }
  0x37   : > { %p545_p10 = scmp.lt.s32.totalorder (!%p484_p9), %s2744_s22, 31  ;;  %s3400_s24 = scalar_lea.vmem (!%p484_p9), [#allocation4], %s2742_s23 }
  0x38   : > { %s3402_s27 = scalar_lea.vmem (!%p484_p9), [#allocation5], %s2742_s23  ;;  %p2750_p11 = scmp.ne.s32.totalorder (!%p484_p9), %s3204_s26, 0 }
  0x3d   : > { %s4637_s22 = smov (!%p545_p10, %s2744_s22), 31  ;;  %566 = sbr.rel (%p2750_p11) target bundleno = 79 (0x4f), region = 130 }
  0x3e   : > { %s2745_s11 = sshll.u32 %s4637_s22, 3  ;;  %vm567_vm0 = vcmask (!%p2750_p11), 277504   ;;  %v3222_v32 = vmov (!%p2750_p11), 0.0  }
  0x3f   : > { %s3388_s14 = scalar_lea.vmem %s4578_s3, %s2745_s11  ;;  %s3393_s18 = scalar_lea.vmem %s4581_s6, %s2745_s11  ;;  %568 = vst.msk [vmem:[#allocation2] sm:$0xff] (!%p2750_p11), %vm567_vm0, %v3222_v32  ;;  %569 = vst.msk [vmem:[#allocation2 + $0x8] sm:$0xff] (!%p2750_p11), %vm567_vm0, %v3222_v32 }
  0x40   : > { %s3398_s10 = scalar_lea.vmem %s4582_s7, %s2745_s11  ;;  %570 = vst.msk [vmem:[#allocation2 + $0x10] sm:$0xff] (!%p2750_p11), %vm567_vm0, %v3222_v32  ;;  %571 = vst.msk [vmem:[#allocation2 + $0x18] sm:$0xff] (!%p2750_p11), %vm567_vm0, %v3222_v32 }
  0x41   : > { %572 = vst.msk [vmem:[#allocation2 + $0x20] sm:$0xff] (!%p2750_p11), %vm567_vm0, %v3222_v32  ;;  %573 = vst.msk [vmem:[#allocation2 + $0x28] sm:$0xff] (!%p2750_p11), %vm567_vm0, %v3222_v32 }
  0x42   : > { %574 = vst.msk [vmem:[#allocation2 + $0x30] sm:$0xff] (!%p2750_p11), %vm567_vm0, %v3222_v32  ;;  %575 = vst.msk [vmem:[#allocation2 + $0x38] sm:$0xff] (!%p2750_p11), %vm567_vm0, %v3222_v32 }
  0x43   : > { %576 = vst.msk [vmem:[#allocation2 + $0x40] sm:$0xff] (!%p2750_p11), %vm567_vm0, %v3222_v32  ;;  %577 = vst.msk [vmem:[#allocation2 + $0x48] sm:$0xff] (!%p2750_p11), %vm567_vm0, %v3222_v32 }
  0x44   : > { %578 = vst.msk [vmem:[#allocation2 + $0x50] sm:$0xff] %vm567_vm0, %v3222_v32  ;;  %579 = vst.msk [vmem:[#allocation2 + $0x58] sm:$0xff] %vm567_vm0, %v3222_v32 }
  0x45   : > { %580 = vst.msk [vmem:[#allocation2 + $0x60] sm:$0xff] %vm567_vm0, %v3222_v32  ;;  %581 = vst.msk [vmem:[#allocation2 + $0x68] sm:$0xff] %vm567_vm0, %v3222_v32 }
  0x46   : > { %582 = vst.msk [vmem:[#allocation2 + $0x70] sm:$0xff] %vm567_vm0, %v3222_v32  ;;  %583 = vst.msk [vmem:[#allocation2 + $0x78] sm:$0xff] %vm567_vm0, %v3222_v32 }
  0x47   : > { %584 = vst.msk [vmem:[#allocation3] sm:$0xff] %vm567_vm0, %v3222_v32  ;;  %585 = vst.msk [vmem:[#allocation3 + $0x8] sm:$0xff] %vm567_vm0, %v3222_v32 }
  0x48   : > { %586 = vst.msk [vmem:[#allocation3 + $0x10] sm:$0xff] %vm567_vm0, %v3222_v32  ;;  %587 = vst.msk [vmem:[#allocation3 + $0x18] sm:$0xff] %vm567_vm0, %v3222_v32 }
  0x49   : > { %588 = vst.msk [vmem:[#allocation3 + $0x20] sm:$0xff] %vm567_vm0, %v3222_v32  ;;  %589 = vst.msk [vmem:[#allocation3 + $0x28] sm:$0xff] %vm567_vm0, %v3222_v32 }
  0x4a   : > { %590 = vst.msk [vmem:[#allocation3 + $0x30] sm:$0xff] %vm567_vm0, %v3222_v32  ;;  %591 = vst.msk [vmem:[#allocation3 + $0x38] sm:$0xff] %vm567_vm0, %v3222_v32 }
  0x4b   : > { %592 = vst.msk [vmem:[#allocation3 + $0x40] sm:$0xff] %vm567_vm0, %v3222_v32  ;;  %593 = vst.msk [vmem:[#allocation3 + $0x48] sm:$0xff] %vm567_vm0, %v3222_v32 }
  0x4c   : > { %594 = vst.msk [vmem:[#allocation3 + $0x50] sm:$0xff] %vm567_vm0, %v3222_v32  ;;  %595 = vst.msk [vmem:[#allocation3 + $0x58] sm:$0xff] %vm567_vm0, %v3222_v32 }
  0x4d   : > { %596 = vst.msk [vmem:[#allocation3 + $0x60] sm:$0xff] %vm567_vm0, %v3222_v32  ;;  %597 = vst.msk [vmem:[#allocation3 + $0x68] sm:$0xff] %vm567_vm0, %v3222_v32 }
  0x4e   : > { %598 = vst.msk [vmem:[#allocation3 + $0x70] sm:$0xff] %vm567_vm0, %v3222_v32  ;;  %599 = vst.msk [vmem:[#allocation3 + $0x78] sm:$0xff] %vm567_vm0, %v3222_v32 }
  0x4f PF: > { %s2751_s21 = sshll.u32 %s3204_s26, 7  ;;  %v3078_v33 = vld [vmem:[%s3400_s24] sm:$0xff]   ;;  %v3080_v43 = vld [vmem:[%s3400_s24 + $0x8] sm:$0xff]   ;;  %v3082_v45 = vld [vmem:[%s3400_s24 + $0x10] sm:$0xff]   ;;  %vm862_vm1 = vcmask 277504   ;;  %p2777_p12 = scmp.ne.s32.totalorder %s3204_s26, 1 }
  0x50   : > { %s601_s22 = sshra.s32 %s2751_s21, 3  ;;  %v3079_v34 = vld [vmem:[%s3402_s27] sm:$0xff]   ;;  %2893 = vmatprep.mubr.bf16.mxu0 %v3078_v33  ;;  %v3081_v44 = vld [vmem:[%s3402_s27 + $0x8] sm:$0xff]   ;;  %v3083_v46 = vld [vmem:[%s3402_s27 + $0x10] sm:$0xff]  }
  0x51   : > { %s2752_s23 = sshll.u32 %s601_s22, 2  ;;  %2925 = vmatprep.mubr.bf16.mxu1 %v3079_v34  ;;  %v3084_v47 = vld [vmem:[%s3400_s24 + $0x18] sm:$0xff]   ;;  %v3086_v49 = vld [vmem:[%s3400_s24 + $0x20] sm:$0xff]   ;;  %v3088_v51 = vld [vmem:[%s3400_s24 + $0x28] sm:$0xff]  }
  0x52   : > { %s3443_s13 = scalar_lea.vmem %s4577_s2, %s2752_s23  ;;  %v3085_v48 = vld [vmem:[%s3402_s27 + $0x18] sm:$0xff]   ;;  %v3087_v50 = vld [vmem:[%s3402_s27 + $0x20] sm:$0xff]   ;;  %v3089_v52 = vld [vmem:[%s3402_s27 + $0x28] sm:$0xff]  }
  0x53   : > { %v3070_v35 = vld [vmem:[%s3443_s13] sm:$0xff]   ;;  %v3071_v36 = vld [vmem:[%s3443_s13 + $0x8] sm:$0xff]   ;;  %v3072_v37 = vld [vmem:[%s3443_s13 + $0x10] sm:$0xff]  }
  0x54   : > { %2877 = vmatprep.subr.bf16.mxu0 %v3070_v35  ;;  %2909 = vmatprep.subr.bf16.mxu1 %v3070_v35  ;;  %v3073_v38 = vld [vmem:[%s3443_s13 + $0x18] sm:$0xff]   ;;  %v3074_v39 = vld [vmem:[%s3443_s13 + $0x20] sm:$0xff]   ;;  %v3075_v40 = vld [vmem:[%s3443_s13 + $0x28] sm:$0xff]  }
  0x55   : > { %2878 = vmatpush3.bf16.msra.mxu0 %v3070_v35  ;;  %2910 = vmatpush3.bf16.msra.mxu1 %v3070_v35  ;;  %v3076_v41 = vld [vmem:[%s3443_s13 + $0x30] sm:$0xff]   ;;  %v3077_v42 = vld [vmem:[%s3443_s13 + $0x38] sm:$0xff]   ;;  %v621_v59 = vld [vmem:[#allocation2] sm:$0xff] }
  0x56   : > { %2879 = vmatprep.subr.bf16.mxu0 %v3071_v36  ;;  %2911 = vmatprep.subr.bf16.mxu1 %v3071_v36  ;;  %v3090_v53 = vld [vmem:[%s3400_s24 + $0x30] sm:$0xff]   ;;  %v3092_v55 = vld [vmem:[%s3400_s24 + $0x38] sm:$0xff]   ;;  %v879_v60 = vld [vmem:[#allocation3] sm:$0xff] }
  0x57   : > { %v3091_v54 = vld [vmem:[%s3402_s27 + $0x30] sm:$0xff]   ;;  %v3093_v56 = vld [vmem:[%s3402_s27 + $0x38] sm:$0xff]   ;;  %v622_v5 = vld [vmem:[#allocation2 + $0x8] sm:$0xff] }
  0x58   : > { %v623_v57 = vld [vmem:[#allocation2 + $0x10] sm:$0xff]  ;;  %v624_v63 = vld [vmem:[#allocation2 + $0x18] sm:$0xff]  ;;  %v880_v6 = vld [vmem:[#allocation3 + $0x8] sm:$0xff] }
  0x59   : > { %2880 = vmatpush3.bf16.msra.mxu0 %v3071_v36  ;;  %2912 = vmatpush3.bf16.msra.mxu1 %v3071_v36  ;;  %v881_v58 = vld [vmem:[#allocation3 + $0x10] sm:$0xff]  ;;  %v882_v0 = vld [vmem:[#allocation3 + $0x18] sm:$0xff]  ;;  %v625_v19 = vld [vmem:[#allocation2 + $0x20] sm:$0xff] }
  0x5a   : > { %2881 = vmatprep.subr.bf16.mxu0 %v3072_v37  ;;  %2913 = vmatprep.subr.bf16.mxu1 %v3072_v37  ;;  %v627_v17 = vld [vmem:[#allocation2 + $0x30] sm:$0xff]  ;;  %v883_v20 = vld [vmem:[#allocation3 + $0x20] sm:$0xff]  ;;  %v628_v23 = vld [vmem:[#allocation2 + $0x38] sm:$0xff] }
  0x5b   : > { %v885_v18 = vld [vmem:[#allocation3 + $0x30] sm:$0xff]  ;;  %v886_v24 = vld [vmem:[#allocation3 + $0x38] sm:$0xff]  ;;  %v626_v29 = vld [vmem:[#allocation2 + $0x28] sm:$0xff] }
  0x5c   : > { %v884_v30 = vld [vmem:[#allocation3 + $0x28] sm:$0xff] }
  0x5d   : > { %2882 = vmatpush3.bf16.msra.mxu0 %v3072_v37  ;;  %2914 = vmatpush3.bf16.msra.mxu1 %v3072_v37 }
  0x5e   : > { %2883 = vmatprep.subr.bf16.mxu0 %v3073_v38  ;;  %2915 = vmatprep.subr.bf16.mxu1 %v3073_v38 }
  0x61   : > { %2884 = vmatpush3.bf16.msra.mxu0 %v3073_v38  ;;  %2916 = vmatpush3.bf16.msra.mxu1 %v3073_v38 }
  0x62   : > { %2885 = vmatprep.subr.bf16.mxu0 %v3074_v39  ;;  %2917 = vmatprep.subr.bf16.mxu1 %v3074_v39 }
  0x65   : > { %2886 = vmatpush3.bf16.msra.mxu0 %v3074_v39  ;;  %2918 = vmatpush3.bf16.msra.mxu1 %v3074_v39 }
  0x66   : > { %2887 = vmatprep.subr.bf16.mxu0 %v3075_v40  ;;  %2919 = vmatprep.subr.bf16.mxu1 %v3075_v40 }
  0x69   : > { %2888 = vmatpush3.bf16.msra.mxu0 %v3075_v40  ;;  %2920 = vmatpush3.bf16.msra.mxu1 %v3075_v40 }
  0x6a   : > { %2889 = vmatprep.subr.bf16.mxu0 %v3076_v41  ;;  %2921 = vmatprep.subr.bf16.mxu1 %v3076_v41 }
  0x6d   : > { %2890 = vmatpush3.bf16.msra.mxu0 %v3076_v41  ;;  %2922 = vmatpush3.bf16.msra.mxu1 %v3076_v41  ;;  %v631_v41 = vld [vmem:[#allocation2 + $0x50] sm:$0xff] }
  0x6e   : > { %2891 = vmatprep.subr.bf16.mxu0 %v3077_v42  ;;  %2923 = vmatprep.subr.bf16.mxu1 %v3077_v42 }
  0x71   : > { %2892 = vmatpush3.bf16.msra.mxu0 %v3077_v42  ;;  %2924 = vmatpush3.bf16.msra.mxu1 %v3077_v42  ;;  %v889_v42 = vld [vmem:[#allocation3 + $0x50] sm:$0xff] }
  0x74   : > { %2894 = vmatmul.mubr.bf16.vlgmr.msra.gmra.mrb[0].mxu0 %v3080_v43  ;;  %2926 = vmatmul.mubr.bf16.vlgmr.msra.gmra.mrb[0].mxu1 %v3081_v44  ;;  %v629_v43 = vld [vmem:[#allocation2 + $0x40] sm:$0xff] }
  0x75   : > { %2897 = vmatprep.mubr.bf16.mxu0 %v3082_v45  ;;  %2929 = vmatprep.mubr.bf16.mxu1 %v3083_v46  ;;  %v887_v44 = vld [vmem:[#allocation3 + $0x40] sm:$0xff] }
  0x7c   : > { %2898 = vmatmul.mubr.bf16.gmra.mrb[4].mxu0 %v3084_v47  ;;  %2930 = vmatmul.mubr.bf16.gmra.mrb[4].mxu1 %v3085_v48  ;;  %v632_v47 = vld [vmem:[#allocation2 + $0x58] sm:$0xff] }
  0x7d   : > { %2901 = vmatprep.mubr.bf16.mxu0 %v3086_v49  ;;  %2933 = vmatprep.mubr.bf16.mxu1 %v3087_v50  ;;  %v890_v48 = vld [vmem:[#allocation3 + $0x58] sm:$0xff] }
  0x84   : > { %2902 = vmatmul.mubr.bf16.gmra.mrb[8].mxu0 %v3088_v51  ;;  %2934 = vmatmul.mubr.bf16.gmra.mrb[8].mxu1 %v3089_v52 }
  0x85   : > { %2905 = vmatprep.mubr.bf16.mxu0 %v3090_v53  ;;  %2937 = vmatprep.mubr.bf16.mxu1 %v3091_v54  ;;  %v630_v53 = vld [vmem:[#allocation2 + $0x48] sm:$0xff] }
  0x86   : > { %v888_v54 = vld [vmem:[#allocation3 + $0x48] sm:$0xff] }
  0x8c   : > { %2906 = vmatmul.mubr.bf16.gmra.mrb[12].mxu0 %v3092_v55  ;;  %2938 = vmatmul.mubr.bf16.gmra.mrb[12].mxu1 %v3093_v56 }
 0x147   : > { %v2895_v61 = vpop.f32.mrb[0].mxu0  ;;  %v2927_v62 = vpop.f32.mrb[0].mxu1 }
 0x148   : > { %v848_v1 = vadd.f32 %v2895_v61, %v623_v57  ;;  %v1058_v2 = vadd.f32 %v2927_v62, %v881_v58  ;;  %v783_v3 = vpop.f32.mrb[1].mxu0  ;;  %v993_v4 = vpop.f32.mrb[1].mxu1 }
 0x149   : > { %v846_v7 = vadd.f32 %v783_v3, %v621_v59  ;;  %v1056_v8 = vadd.f32 %v993_v4, %v879_v60  ;;  %v2896_v9 = vpop.f32.mrb[2].mxu0  ;;  %v2928_v10 = vpop.f32.mrb[2].mxu1  ;;  %v633_v3 = vld [vmem:[#allocation2 + $0x60] sm:$0xff] }
 0x14a   : > { %865 = vst.msk [vmem:[#allocation2 + $0x10] sm:$0xff] %vm862_vm1, %v848_v1  ;;  %1074 = vst.msk [vmem:[#allocation3 + $0x10] sm:$0xff] %vm862_vm1, %v1058_v2  ;;  %v849_v11 = vadd.f32 %v2896_v9, %v624_v63  ;;  %v1059_v12 = vadd.f32 %v2928_v10, %v882_v0  ;;  %v786_v13 = vpop.f32.mrb[3].mxu0  ;;  %v996_v14 = vpop.f32.mrb[3].mxu1  ;;  %v635_v1 = vld [vmem:[#allocation2 + $0x70] sm:$0xff]  ;;  %v891_v4 = vld [vmem:[#allocation3 + $0x60] sm:$0xff] }
 0x14b   : > { %863 = vst.msk [vmem:[#allocation2] sm:$0xff] %vm862_vm1, %v846_v7  ;;  %1072 = vst.msk [vmem:[#allocation3] sm:$0xff] %vm862_vm1, %v1056_v8  ;;  %v847_v15 = vadd.f32 %v786_v13, %v622_v5  ;;  %v1057_v16 = vadd.f32 %v996_v14, %v880_v6  ;;  %v893_v2 = vld [vmem:[#allocation3 + $0x70] sm:$0xff]  ;;  %v636_v7 = vld [vmem:[#allocation2 + $0x78] sm:$0xff] }
 0x14c   : > { %866 = vst.msk [vmem:[#allocation2 + $0x18] sm:$0xff] %vm862_vm1, %v849_v11  ;;  %1075 = vst.msk [vmem:[#allocation3 + $0x18] sm:$0xff] %vm862_vm1, %v1059_v12  ;;  %v894_v8 = vld [vmem:[#allocation3 + $0x78] sm:$0xff]  ;;  %v634_v13 = vld [vmem:[#allocation2 + $0x68] sm:$0xff] }
 0x14d   : > { %864 = vst.msk [vmem:[#allocation2 + $0x8] sm:$0xff] %vm862_vm1, %v847_v15  ;;  %1073 = vst.msk [vmem:[#allocation3 + $0x8] sm:$0xff] %vm862_vm1, %v1057_v16  ;;  %v892_v14 = vld [vmem:[#allocation3 + $0x68] sm:$0xff] }
 0x14f   : > { %v2899_v21 = vpop.f32.mrb[4].mxu0  ;;  %v2931_v22 = vpop.f32.mrb[4].mxu1 }
 0x150   : > { %v852_v25 = vadd.f32 %v2899_v21, %v627_v17  ;;  %v1062_v26 = vadd.f32 %v2931_v22, %v885_v18  ;;  %v799_v27 = vpop.f32.mrb[5].mxu0  ;;  %v1009_v28 = vpop.f32.mrb[5].mxu1 }
 0x151   : > { %v850_v31 = vadd.f32 %v799_v27, %v625_v19  ;;  %v1060_v32 = vadd.f32 %v1009_v28, %v883_v20  ;;  %v2900_v33 = vpop.f32.mrb[6].mxu0  ;;  %v2932_v34 = vpop.f32.mrb[6].mxu1 }
 0x152   : > { %869 = vst.msk [vmem:[#allocation2 + $0x30] sm:$0xff] %vm862_vm1, %v852_v25  ;;  %1078 = vst.msk [vmem:[#allocation3 + $0x30] sm:$0xff] %vm862_vm1, %v1062_v26  ;;  %v853_v35 = vadd.f32 %v2900_v33, %v628_v23  ;;  %v1063_v36 = vadd.f32 %v2932_v34, %v886_v24  ;;  %v802_v37 = vpop.f32.mrb[7].mxu0  ;;  %v1012_v38 = vpop.f32.mrb[7].mxu1 }
 0x153   : > { %867 = vst.msk [vmem:[#allocation2 + $0x20] sm:$0xff] %vm862_vm1, %v850_v31  ;;  %1076 = vst.msk [vmem:[#allocation3 + $0x20] sm:$0xff] %vm862_vm1, %v1060_v32  ;;  %v851_v39 = vadd.f32 %v802_v37, %v626_v29  ;;  %v1061_v40 = vadd.f32 %v1012_v38, %v884_v30 }
 0x154   : > { %870 = vst.msk [vmem:[#allocation2 + $0x38] sm:$0xff] %vm862_vm1, %v853_v35  ;;  %1079 = vst.msk [vmem:[#allocation3 + $0x38] sm:$0xff] %vm862_vm1, %v1063_v36 }
 0x155   : > { %868 = vst.msk [vmem:[#allocation2 + $0x28] sm:$0xff] %vm862_vm1, %v851_v39  ;;  %1077 = vst.msk [vmem:[#allocation3 + $0x28] sm:$0xff] %vm862_vm1, %v1061_v40 }
 0x157   : > { %v2903_v45 = vpop.f32.mrb[8].mxu0  ;;  %v2935_v46 = vpop.f32.mrb[8].mxu1 }
 0x158   : > { %v856_v49 = vadd.f32 %v2903_v45, %v631_v41  ;;  %v1066_v50 = vadd.f32 %v2935_v46, %v889_v42  ;;  %v815_v51 = vpop.f32.mrb[9].mxu0  ;;  %v1025_v52 = vpop.f32.mrb[9].mxu1 }
 0x159   : > { %v854_v55 = vadd.f32 %v815_v51, %v629_v43  ;;  %v1064_v56 = vadd.f32 %v1025_v52, %v887_v44  ;;  %v2904_v57 = vpop.f32.mrb[10].mxu0  ;;  %v2936_v58 = vpop.f32.mrb[10].mxu1 }
 0x15a   : > { %873 = vst.msk [vmem:[#allocation2 + $0x50] sm:$0xff] %vm862_vm1, %v856_v49  ;;  %1082 = vst.msk [vmem:[#allocation3 + $0x50] sm:$0xff] %vm862_vm1, %v1066_v50  ;;  %v857_v59 = vadd.f32 %v2904_v57, %v632_v47  ;;  %v1067_v60 = vadd.f32 %v2936_v58, %v890_v48  ;;  %v818_v61 = vpop.f32.mrb[11].mxu0  ;;  %v1028_v62 = vpop.f32.mrb[11].mxu1 }
 0x15b   : > { %871 = vst.msk [vmem:[#allocation2 + $0x40] sm:$0xff] %vm862_vm1, %v854_v55  ;;  %1080 = vst.msk [vmem:[#allocation3 + $0x40] sm:$0xff] %vm862_vm1, %v1064_v56  ;;  %v855_v63 = vadd.f32 %v818_v61, %v630_v53  ;;  %v1065_v0 = vadd.f32 %v1028_v62, %v888_v54 }
 0x15c   : > { %874 = vst.msk [vmem:[#allocation2 + $0x58] sm:$0xff] %vm862_vm1, %v857_v59  ;;  %1083 = vst.msk [vmem:[#allocation3 + $0x58] sm:$0xff] %vm862_vm1, %v1067_v60 }
 0x15d   : > { %872 = vst.msk [vmem:[#allocation2 + $0x48] sm:$0xff] %vm862_vm1, %v855_v63  ;;  %1081 = vst.msk [vmem:[#allocation3 + $0x48] sm:$0xff] %vm862_vm1, %v1065_v0 }
 0x15f   : > { %v2907_v5 = vpop.f32.mrb[12].mxu0  ;;  %v2939_v6 = vpop.f32.mrb[12].mxu1  ;;  %1091 = sbr.rel (%p2777_p12) target bundleno = 828 (0x33c), region = 134 }
 0x160   : > { %v860_v9 = vadd.f32 %v2907_v5, %v635_v1  ;;  %v1070_v10 = vadd.f32 %v2939_v6, %v893_v2  ;;  %v831_v11 = vpop.f32.mrb[13].mxu0  ;;  %v1041_v12 = vpop.f32.mrb[13].mxu1 }
 0x161   : > { %v858_v15 = vadd.f32 %v831_v11, %v633_v3  ;;  %v1068_v16 = vadd.f32 %v1041_v12, %v891_v4  ;;  %v2908_v17 = vpop.f32.mrb[14].mxu0  ;;  %v2940_v18 = vpop.f32.mrb[14].mxu1 }
 0x162   : > { %877 = vst.msk [vmem:[#allocation2 + $0x70] sm:$0xff] %vm862_vm1, %v860_v9  ;;  %1086 = vst.msk [vmem:[#allocation3 + $0x70] sm:$0xff] %vm862_vm1, %v1070_v10  ;;  %v861_v19 = vadd.f32 %v2908_v17, %v636_v7  ;;  %v1071_v20 = vadd.f32 %v2940_v18, %v894_v8  ;;  %v834_v21 = vpop.f32.mrb[15].mxu0  ;;  %v1044_v22 = vpop.f32.mrb[15].mxu1 }
 0x163   : > { %875 = vst.msk [vmem:[#allocation2 + $0x60] sm:$0xff] %vm862_vm1, %v858_v15  ;;  %1084 = vst.msk [vmem:[#allocation3 + $0x60] sm:$0xff] %vm862_vm1, %v1068_v16  ;;  %v859_v23 = vadd.f32 %v834_v21, %v634_v13  ;;  %v1069_v24 = vadd.f32 %v1044_v22, %v892_v14 }
 0x164   : > { %878 = vst.msk [vmem:[#allocation2 + $0x78] sm:$0xff] %vm862_vm1, %v861_v19  ;;  %1087 = vst.msk [vmem:[#allocation3 + $0x78] sm:$0xff] %vm862_vm1, %v1071_v20 }
 0x165   : > { %876 = vst.msk [vmem:[#allocation2 + $0x68] sm:$0xff] %vm862_vm1, %v859_v23  ;;  %1085 = vst.msk [vmem:[#allocation3 + $0x68] sm:$0xff] %vm862_vm1, %v1069_v24 }
 0x166   : > { %v3500_v25 = vld [vmem:[#allocation2 + $0x10] sm:$0xff]  ;;  %v3502_v26 = vld [vmem:[#allocation2 + $0x18] sm:$0xff]  ;;  %v1092_v29 = vld [vmem:[#allocation2] sm:$0xff]  ;;  %vm1708_vm2 = vcmask 261120   ;;  %s3223_s26 = smov 1   ;;  %s3224_s13 = smov 127  }
 0x167   : > { %v3505_v27 = vld [vmem:[%s3388_s14 + $0x10] sm:$0xff]  ;;  %v3510_v30 = vld [vmem:[%s3388_s14] sm:$0xff]  ;;  %v3513_v31 = vld [vmem:[%s3388_s14 + $0x18] sm:$0xff]  ;;  %v1685_v0 = vpack.c.bf16 %v3502_v26, %v3500_v25  ;;  %s3227_s16 = smov 125   ;;  %s3228_s17 = smov 124  }
 0x168   : > { %v1142_v28 = vadd.f32 %v3505_v27, %v3500_v25  ;;  %v1140_v32 = vadd.f32 %v3510_v30, %v1092_v29  ;;  %v1093_v33 = vld [vmem:[#allocation2 + $0x8] sm:$0xff]  ;;  %v1143_v35 = vadd.f32 %v3513_v31, %v3502_v26  ;;  %v1096_v40 = vld [vmem:[#allocation2 + $0x20] sm:$0xff]  ;;  %v3535_v47 = vld [vmem:[#allocation2 + $0x38] sm:$0xff]  ;;  %s3229_s19 = smov 95   ;;  %s3230_s20 = smov 96  }
 0x169   : > { %v3517_v34 = vld [vmem:[%s3388_s14 + $0x8] sm:$0xff]  ;;  %v1684_v36 = vpack.c.bf16 %v1093_v33, %v1092_v29  ;;  %v3528_v41 = vld [vmem:[%s3388_s14 + $0x20] sm:$0xff]  ;;  %v3538_v48 = vld [vmem:[%s3388_s14 + $0x38] sm:$0xff] }
 0x16a   : > { %1192 = vrot.lane.b32.xlu1 %v1142_v28, %s3223_s26  ;;  %1188 = vrot.lane.b32.xlu0 %v1140_v32, %s3223_s26  ;;  %v1141_v37 = vadd.f32 %v3517_v34, %v1093_v33  ;;  %v1097_v38 = vld [vmem:[#allocation2 + $0x28] sm:$0xff]  ;;  %v1100_v43 = vld [vmem:[#allocation2 + $0x40] sm:$0xff]  ;;  %v1144_v46 = vadd.f32 %v3528_v41, %v1096_v40  ;;  %v3540_v49 = vld [vmem:[#allocation2 + $0x30] sm:$0xff]  ;;  %v1147_v51 = vadd.f32 %v3538_v48, %v3535_v47 }
 0x16b   : > { %v3525_v39 = vld [vmem:[%s3388_s14 + $0x28] sm:$0xff]  ;;  %2945 = vmatprep.mubr.msk.bf16.mxu0 %vm1708_vm2, %v1684_v36  ;;  %v3543_v50 = vld [vmem:[%s3388_s14 + $0x30] sm:$0xff]  ;;  %v3096_v52 = vld [vmem:[%s4579_s4] sm:$0xff]   ;;  %v1686_v3 = vpack.c.bf16 %v1097_v38, %v1096_v40  ;;  %v1687_v14 = vpack.c.bf16 %v3535_v47, %v3540_v49  ;;  %v2183_v36 = vpack.c.bf16 %v3517_v34, %v3510_v30 }
 0x16c   : > { %v1101_v42 = vld [vmem:[#allocation2 + $0x48] sm:$0xff]  ;;  %v1145_v44 = vadd.f32 %v3525_v39, %v1097_v38  ;;  %v1146_v53 = vadd.f32 %v3543_v50, %v3540_v49  ;;  %v3562_v56 = vld [vmem:[%s3388_s14 + $0x40] sm:$0xff]  ;;  %2941 = vmatprep.subr.bf16.mxu0 %v3096_v52  ;;  %3001 = vmatprep.subr.bf16.mxu1 %v3096_v52  ;;  %v1103_v58 = vld [vmem:[#allocation2 + $0x58] sm:$0xff]  ;;  %v2186_v47 = vpack.c.bf16 %v3538_v48, %v3543_v50 }
 0x16d   : > { %v1688_v45 = vpack.c.bf16 %v1101_v42, %v1100_v43  ;;  %v3556_v54 = vld [vmem:[%s3388_s14 + $0x48] sm:$0xff]  ;;  %2942 = vmatpush3.bf16.msra.mxu0 %v3096_v52  ;;  %3003 = vmatpush3.bf16.msra.mxu1 %v3096_v52  ;;  %v3567_v59 = vld [vmem:[%s3388_s14 + $0x58] sm:$0xff]  ;;  %v1148_v60 = vadd.f32 %v3562_v56, %v1100_v43  ;;  %v1102_v61 = vld [vmem:[#allocation2 + $0x50] sm:$0xff] }
 0x16e   : > { %1194 = vrot.lane.b32.xlu1 %v1143_v35, %s3223_s26  ;;  %1190 = vrot.lane.b32.xlu0 %v1141_v37, %s3223_s26  ;;  %v3097_v55 = vld [vmem:[%s4579_s4 + $0x8] sm:$0xff]   ;;  %v1149_v57 = vadd.f32 %v3556_v54, %v1101_v42  ;;  %v3572_v62 = vld [vmem:[%s3388_s14 + $0x50] sm:$0xff]  ;;  %v1689_v1 = vpack.c.bf16 %v1103_v58, %v1102_v61  ;;  %v1104_v2 = vld [vmem:[#allocation2 + $0x60] sm:$0xff]  ;;  %v1151_v5 = vadd.f32 %v3567_v59, %v1103_v58 }
 0x16f   : > { %2953 = vmatprep.mubr.msk.bf16.mxu1 %vm1708_vm2, %v1688_v45  ;;  %2943 = vmatprep.subr.bf16.mxu0 %v3097_v55  ;;  %v1105_v63 = vld [vmem:[#allocation2 + $0x68] sm:$0xff]  ;;  %v1150_v6 = vadd.f32 %v3572_v62, %v1102_v61  ;;  %v3584_v8 = vld [vmem:[%s3388_s14 + $0x60] sm:$0xff]  ;;  %v1107_v11 = vld [vmem:[#allocation2 + $0x78] sm:$0xff]  ;;  %v2184_v37 = vpack.c.bf16 %v3513_v31, %v3505_v27  ;;  %v2187_v58 = vpack.c.bf16 %v3556_v54, %v3562_v56 }
 0x170   : > { %3002 = vmatprep.subr.bf16.mxu1 %v3097_v55  ;;  %v1690_v4 = vpack.c.bf16 %v1105_v63, %v1104_v2  ;;  %v3581_v7 = vld [vmem:[%s3388_s14 + $0x68] sm:$0xff]  ;;  %v1152_v10 = vadd.f32 %v3584_v8, %v1104_v2  ;;  %v3595_v12 = vld [vmem:[%s3388_s14 + $0x78] sm:$0xff]  ;;  %v1106_v13 = vld [vmem:[#allocation2 + $0x70] sm:$0xff] }
 0x171   : > { %2944 = vmatpush3.bf16.msra.mxu0 %v3097_v55  ;;  %3004 = vmatpush3.bf16.msra.mxu1 %v3097_v55  ;;  %v1153_v9 = vadd.f32 %v3581_v7, %v1105_v63  ;;  %v3600_v15 = vld [vmem:[%s3388_s14 + $0x70] sm:$0xff]  ;;  %v1691_v16 = vpack.c.bf16 %v1107_v11, %v1106_v13  ;;  %v3602_v17 = vld [vmem:[#allocation3] sm:$0xff]  ;;  %v3604_v18 = vld [vmem:[#allocation3 + $0x8] sm:$0xff]  ;;  %v1155_v21 = vadd.f32 %v3595_v12, %v1107_v11 }
 0x172   : > { %1198 = vrot.lane.b32.xlu1 %v1145_v44, %s3223_s26  ;;  %1196 = vrot.lane.b32.xlu0 %v1144_v46, %s3223_s26  ;;  %v1926_v19 = vpack.c.bf16 %v3604_v18, %v3602_v17  ;;  %v3098_v20 = vld [vmem:[%s4579_s4 + $0x10] sm:$0xff]   ;;  %v1154_v22 = vadd.f32 %v3600_v15, %v1106_v13  ;;  %v3099_v23 = vld [vmem:[%s4579_s4 + $0x18] sm:$0xff]   ;;  %v3632_v29 = vld [vmem:[#allocation3 + $0x28] sm:$0xff]  ;;  %v2185_v46 = vpack.c.bf16 %v3525_v39, %v3528_v41 }
 0x173   : > { %2961 = vmatprep.subr.bf16.mxu1 %v3098_v20  ;;  %v3100_v24 = vld [vmem:[%s4579_s4 + $0x20] sm:$0xff]   ;;  %v3626_v25 = vld [vmem:[#allocation3 + $0x10] sm:$0xff]  ;;  %v3628_v26 = vld [vmem:[#allocation3 + $0x18] sm:$0xff]  ;;  %v2189_v2 = vpack.c.bf16 %v3581_v7, %v3584_v8 }
 0x174   : > { %2946 = vmatmul.mubr.msk.bf16.vlgmr.msra.gmra.mrb[0].mxu0 %vm1708_vm2, %v1685_v0  ;;  %2954 = vmatmul.mubr.msk.bf16.vlgmr.msra.gmra.mrb[0].mxu1 %vm1708_vm2, %v1689_v1  ;;  %v1927_v28 = vpack.c.bf16 %v3628_v26, %v3626_v25  ;;  %v3634_v32 = vld [vmem:[#allocation3 + $0x20] sm:$0xff]  ;;  %v3101_v35 = vld [vmem:[%s4579_s4 + $0x28] sm:$0xff]   ;;  %v3656_v38 = vld [vmem:[#allocation3 + $0x38] sm:$0xff]  ;;  %v3225_v1 = vmov 33   ;;  %v1158_v13 = vadd.f32 %v3505_v27, %v3626_v25 }
 0x175   : > { %2949 = vmatprep.mubr.msk.bf16.mxu0 %vm1708_vm2, %v1686_v3  ;;  %2957 = vmatprep.mubr.msk.bf16.mxu1 %vm1708_vm2, %v1690_v4  ;;  %v1928_v33 = vpack.c.bf16 %v3632_v29, %v3634_v32  ;;  %v3658_v40 = vld [vmem:[#allocation3 + $0x30] sm:$0xff]  ;;  %v3662_v43 = vld [vmem:[#allocation3 + $0x48] sm:$0xff]  ;;  %v3664_v44 = vld [vmem:[#allocation3 + $0x40] sm:$0xff]  ;;  %v2190_v3 = vpack.c.bf16 %v3595_v12, %v3600_v15 }
 0x176   : > { %1202 = vrot.lane.b32.xlu1 %v1147_v51, %s3223_s26  ;;  %1200 = vrot.lane.b32.xlu0 %v1146_v53, %s3223_s26  ;;  %v1929_v42 = vpack.c.bf16 %v3656_v38, %v3658_v40  ;;  %v1930_v45 = vpack.c.bf16 %v3662_v43, %v3664_v44  ;;  %v3684_v49 = vld [vmem:[#allocation3 + $0x58] sm:$0xff]  ;;  %v3686_v51 = vld [vmem:[#allocation3 + $0x50] sm:$0xff]  ;;  %v3690_v53 = vld [vmem:[#allocation3 + $0x68] sm:$0xff] }
 0x177   : > { %2962 = vmatpush3.bf16.msra.mxu1 %v3098_v20  ;;  %2981 = vmatprep.subr.bf16.mxu0 %v3100_v24  ;;  %v1931_v52 = vpack.c.bf16 %v3684_v49, %v3686_v51  ;;  %v3692_v55 = vld [vmem:[#allocation3 + $0x60] sm:$0xff]  ;;  %v3712_v61 = vld [vmem:[#allocation3 + $0x78] sm:$0xff]  ;;  %v3714_v63 = vld [vmem:[#allocation3 + $0x70] sm:$0xff] }
 0x178   : > { %2963 = vmatprep.subr.bf16.mxu1 %v3099_v23  ;;  %2982 = vmatpush3.bf16.msra.mxu0 %v3100_v24  ;;  %v1933_v0 = vpack.c.bf16 %v3712_v61, %v3714_v63 }
 0x179   : > { %2983 = vmatprep.subr.bf16.mxu0 %v3101_v35  ;;  %3095 = vset.pattern.permute.xlu1 %v3225_v1 }
 0x17a   : > { %1206 = vrot.lane.b32.xlu1 %v1149_v57, %s3223_s26  ;;  %1204 = vrot.lane.b32.xlu0 %v1148_v60, %s3223_s26  ;;  %v1932_v57 = vpack.c.bf16 %v3690_v53, %v3692_v55  ;;  %v2188_v60 = vpack.c.bf16 %v3567_v59, %v3572_v62 }
 0x17b   : > { %2964 = vmatpush3.bf16.msra.mxu1 %v3099_v23  ;;  %3094 = vset.pattern.permute.xlu0 %v3225_v1  ;;  %v1161_v23 = vadd.f32 %v3525_v39, %v3632_v29 }
 0x17c   : > { %2950 = vmatmul.mubr.msk.bf16.gmra.mrb[4].mxu0 %vm1708_vm2, %v1687_v14  ;;  %2958 = vmatmul.mubr.msk.bf16.gmra.mrb[4].mxu1 %vm1708_vm2, %v1691_v16  ;;  %v1159_v16 = vadd.f32 %v3513_v31, %v3628_v26 }
 0x17d   : > { %2965 = vmatprep.mubr.msk.bf16.mxu1 %vm1708_vm2, %v1926_v19  ;;  %2984 = vmatpush3.bf16.msra.mxu0 %v3101_v35  ;;  %v1160_v35 = vadd.f32 %v3528_v41, %v3634_v32 }
 0x17e   : > { %1210 = vrot.lane.b32.xlu1 %v1151_v5, %s3223_s26  ;;  %1208 = vrot.lane.b32.xlu0 %v1150_v6, %s3223_s26  ;;  %v1156_v6 = vadd.f32 %v3510_v30, %v3602_v17 }
 0x17f   : > { %2985 = vmatprep.mubr.msk.bf16.mxu0 %vm1708_vm2, %v2183_v36 }
 0x182   : > { %1214 = vrot.lane.b32.xlu1 %v1153_v9, %s3223_s26  ;;  %1212 = vrot.lane.b32.xlu0 %v1152_v10, %s3223_s26  ;;  %v1157_v10 = vadd.f32 %v3517_v34, %v3604_v18 }
 0x184   : > { %2966 = vmatmul.mubr.msk.bf16.vlgmr.msra.gmra.mrb[8].mxu1 %vm1708_vm2, %v1927_v28  ;;  %2986 = vmatmul.mubr.msk.bf16.vlgmr.msra.gmra.mrb[8].mxu0 %vm1708_vm2, %v2184_v37  ;;  %v1163_v37 = vadd.f32 %v3538_v48, %v3656_v38 }
 0x185   : > { %2969 = vmatprep.mubr.msk.bf16.mxu1 %vm1708_vm2, %v1928_v33  ;;  %2989 = vmatprep.mubr.msk.bf16.mxu0 %vm1708_vm2, %v2185_v46 }
 0x186   : > { %1218 = vrot.lane.b32.xlu1 %v1155_v21, %s3223_s26  ;;  %1216 = vrot.lane.b32.xlu0 %v1154_v22, %s3223_s26  ;;  %s3226_s26 = smov 126  }
 0x18a   : > { %1430 = vrot.lane.b32.xlu1 %v3517_v34, %s3224_s13  ;;  %1428 = vrot.lane.b32.xlu0 %v3510_v30, %s3224_s13 }
 0x18c   : > { %2970 = vmatmul.mubr.msk.bf16.gmra.mrb[12].mxu1 %vm1708_vm2, %v1929_v42  ;;  %2990 = vmatmul.mubr.msk.bf16.gmra.mrb[12].mxu0 %vm1708_vm2, %v2186_v47 }
 0x18d   : > { %2973 = vmatprep.mubr.msk.bf16.mxu1 %vm1708_vm2, %v1930_v45  ;;  %2993 = vmatprep.mubr.msk.bf16.mxu0 %vm1708_vm2, %v2187_v58 }
 0x18e   : > { %1434 = vrot.lane.b32.xlu1 %v3513_v31, %s3224_s13  ;;  %1432 = vrot.lane.b32.xlu0 %v3505_v27, %s3224_s13 }
 0x192   : > { %1438 = vrot.lane.b32.xlu1 %v3525_v39, %s3224_s13  ;;  %1436 = vrot.lane.b32.xlu0 %v3528_v41, %s3224_s13 }
 0x194   : > { %2974 = vmatmul.mubr.msk.bf16.gmra.mrb[16].mxu1 %vm1708_vm2, %v1931_v52  ;;  %2994 = vmatmul.mubr.msk.bf16.gmra.mrb[16].mxu0 %vm1708_vm2, %v2188_v60 }
 0x195   : > { %2977 = vmatprep.mubr.msk.bf16.mxu1 %vm1708_vm2, %v1932_v57  ;;  %2997 = vmatprep.mubr.msk.bf16.mxu0 %vm1708_vm2, %v2189_v2  ;;  %v1164_v2 = vadd.f32 %v3562_v56, %v3664_v44 }
 0x196   : > { %1442 = vrot.lane.b32.xlu1 %v3538_v48, %s3224_s13  ;;  %1440 = vrot.lane.b32.xlu0 %v3543_v50, %s3224_s13 }
 0x19a   : > { %1446 = vrot.lane.b32.xlu1 %v3556_v54, %s3224_s13  ;;  %1444 = vrot.lane.b32.xlu0 %v3562_v56, %s3224_s13 }
 0x19c   : > { %2978 = vmatmul.mubr.msk.bf16.gmra.mrb[20].mxu1 %vm1708_vm2, %v1933_v0  ;;  %2998 = vmatmul.mubr.msk.bf16.gmra.mrb[20].mxu0 %vm1708_vm2, %v2190_v3 }
 0x19e   : > { %1450 = vrot.lane.b32.xlu1 %v3567_v59, %s3224_s13  ;;  %1448 = vrot.lane.b32.xlu0 %v3572_v62, %s3224_s13 }
 0x1a2   : > { %1454 = vrot.lane.b32.xlu1 %v3581_v7, %s3224_s13  ;;  %1452 = vrot.lane.b32.xlu0 %v3584_v8, %s3224_s13 }
 0x1a6   : > { %1458 = vrot.lane.b32.xlu1 %v3595_v12, %s3224_s13  ;;  %1456 = vrot.lane.b32.xlu0 %v3600_v15, %s3224_s13 }
 0x1aa   : > { %1494 = vrot.lane.b32.xlu1 %v3517_v34, %s3226_s26  ;;  %1492 = vrot.lane.b32.xlu0 %v3510_v30, %s3226_s26 }
 0x1ae   : > { %1498 = vrot.lane.b32.xlu1 %v3513_v31, %s3226_s26  ;;  %1496 = vrot.lane.b32.xlu0 %v3505_v27, %s3226_s26 }
 0x1b2   : > { %1502 = vrot.lane.b32.xlu1 %v3525_v39, %s3226_s26  ;;  %1500 = vrot.lane.b32.xlu0 %v3528_v41, %s3226_s26 }
 0x1b6   : > { %1506 = vrot.lane.b32.xlu1 %v3538_v48, %s3226_s26  ;;  %1504 = vrot.lane.b32.xlu0 %v3543_v50, %s3226_s26 }
 0x1ba   : > { %1510 = vrot.lane.b32.xlu1 %v3556_v54, %s3226_s26  ;;  %1508 = vrot.lane.b32.xlu0 %v3562_v56, %s3226_s26 }
 0x1be   : > { %1514 = vrot.lane.b32.xlu1 %v3567_v59, %s3226_s26  ;;  %1512 = vrot.lane.b32.xlu0 %v3572_v62, %s3226_s26 }
 0x1c2   : > { %1518 = vrot.lane.b32.xlu1 %v3581_v7, %s3226_s26  ;;  %1516 = vrot.lane.b32.xlu0 %v3584_v8, %s3226_s26 }
 0x1c6   : > { %1522 = vrot.lane.b32.xlu1 %v3595_v12, %s3226_s26  ;;  %1520 = vrot.lane.b32.xlu0 %v3600_v15, %s3226_s26 }
 0x1ca   : > { %1558 = vrot.lane.b32.xlu1 %v3517_v34, %s3227_s16  ;;  %1556 = vrot.lane.b32.xlu0 %v3510_v30, %s3227_s16 }
 0x1ce   : > { %1562 = vrot.lane.b32.xlu1 %v3513_v31, %s3227_s16  ;;  %1560 = vrot.lane.b32.xlu0 %v3505_v27, %s3227_s16 }
 0x1d2   : > { %1566 = vrot.lane.b32.xlu1 %v3525_v39, %s3227_s16  ;;  %1564 = vrot.lane.b32.xlu0 %v3528_v41, %s3227_s16 }
 0x1d6   : > { %1570 = vrot.lane.b32.xlu1 %v3538_v48, %s3227_s16  ;;  %1568 = vrot.lane.b32.xlu0 %v3543_v50, %s3227_s16 }
 0x1da   : > { %1574 = vrot.lane.b32.xlu1 %v3556_v54, %s3227_s16  ;;  %1572 = vrot.lane.b32.xlu0 %v3562_v56, %s3227_s16 }
 0x1dc   : > { %v1193_v4 = vpop.permute.xlu1 %1192  ;;  %v1189_v5 = vpop.permute.xlu0 %1188 }
 0x1dd   : > { %v3769_v14 = vsub.f32 %v1156_v6, %v1189_v5  ;;  %v3777_v18 = vsub.f32 %v1158_v13, %v1193_v4 }
 0x1de   : > { %1578 = vrot.lane.b32.xlu1 %v3567_v59, %s3227_s16  ;;  %1576 = vrot.lane.b32.xlu0 %v3572_v62, %s3227_s16 }
 0x1df   : > { %v1252_v21 = vand.u32 2147483647, %v3769_v14  ;;  %v1254_v28 = vand.u32 2147483647, %v3777_v18  ;;  %vm1348_vm3 = vcmp.ge.f32.partialorder %v3769_v14, 0.0  ;;  %vm1350_vm5 = vcmp.ge.f32.partialorder %v3777_v18, 0.0 }
 0x1e0   : > { %v1195_v9 = vpop.permute.xlu1 %1194  ;;  %v1191_v11 = vpop.permute.xlu0 %1190 }
 0x1e1   : > { %v3774_v19 = vsub.f32 %v1157_v10, %v1191_v11  ;;  %v3781_v22 = vsub.f32 %v1159_v16, %v1195_v9  ;;  %v1268_v33 = vsub.f32 0.0, %v1252_v21  ;;  %v1270_v32 = vsub.f32 0.0, %v1254_v28 }
 0x1e2   : > { %1582 = vrot.lane.b32.xlu1 %v3581_v7, %s3227_s16  ;;  %1580 = vrot.lane.b32.xlu0 %v3584_v8, %s3227_s16  ;;  %v1167_v10 = vadd.f32 %v3567_v59, %v3684_v49  ;;  %v1166_v11 = vadd.f32 %v3572_v62, %v3686_v51 }
 0x1e3   : > { %v1253_v25 = vand.u32 2147483647, %v3774_v19  ;;  %v1255_v36 = vand.u32 2147483647, %v3781_v22  ;;  %v1284_v47 = vmul.f32 1.442695, %v1268_v33 }
 0x1e4   : > { %v1199_v17 = vpop.permute.xlu1 %1198  ;;  %v1197_v20 = vpop.permute.xlu0 %1196  ;;  %v1288_v1 = vmul.f32 1.442695, %v1270_v32  ;;  %vm1349_vm4 = vcmp.ge.f32.partialorder %v3774_v19, 0.0  ;;  %vm1351_vm6 = vcmp.ge.f32.partialorder %v3781_v22, 0.0 }
 0x1e5   : > { %v3794_v29 = vsub.f32 %v1161_v23, %v1199_v17  ;;  %v1269_v45 = vsub.f32 0.0, %v1253_v25  ;;  %v3802_v52 = vsub.f32 %v1160_v35, %v1197_v20  ;;  %3102 = vpow2.f32 %v1284_v47 }
 0x1e6   : > { %1586 = vrot.lane.b32.xlu1 %v3595_v12, %s3227_s16  ;;  %1584 = vrot.lane.b32.xlu0 %v3600_v15, %s3227_s16  ;;  %v1168_v25 = vadd.f32 %v3584_v8, %v3692_v55  ;;  %v1171_v55 = vadd.f32 %v3595_v12, %v3712_v61 }
 0x1e7   : > { %v1257_v57 = vand.u32 2147483647, %v3794_v29  ;;  %v1286_v60 = vmul.f32 1.442695, %v1269_v45  ;;  %vm1353_vm7 = vcmp.ge.f32.partialorder %v3794_v29, 0.0  ;;  %vm1352_vm8 = vcmp.ge.f32.partialorder %v3802_v52, 0.0 }
 0x1e8   : > { %v1203_v24 = vpop.permute.xlu1 %1202  ;;  %v1201_v26 = vpop.permute.xlu0 %1200 }
 0x1e9   : > { %v3807_v38 = vsub.f32 %v1163_v37, %v1203_v24  ;;  %v1273_v4 = vsub.f32 0.0, %v1257_v57  ;;  %3104 = vpow2.f32 %v1286_v60 }
 0x1ea   : > { %1622 = vrot.lane.b32.xlu1 %v3517_v34, %s3228_s17  ;;  %1620 = vrot.lane.b32.xlu0 %v3510_v30, %s3228_s17  ;;  %v1162_v34 = vadd.f32 %v3543_v50, %v3658_v40  ;;  %v1271_v30 = vsub.f32 0.0, %v1255_v36  ;;  %v1165_v40 = vadd.f32 %v3556_v54, %v3662_v43  ;;  %3106 = vpow2.f32 %v1288_v1 }
 0x1eb   : > { %v1259_v5 = vand.u32 2147483647, %v3807_v38  ;;  %v1294_v13 = vmul.f32 1.442695, %v1273_v4  ;;  %vm1355_vm9 = vcmp.ge.f32.partialorder %v3807_v38, 0.0 }
 0x1ec   : > { %v1207_v42 = vpop.permute.xlu1 %1206  ;;  %v1205_v46 = vpop.permute.xlu0 %1204  ;;  %v3809_v0 = vsub.f32 %v1162_v34, %v1201_v26  ;;  %v1290_v3 = vmul.f32 1.442695, %v1271_v30 }
 0x1ed   : > { %v3822_v9 = vsub.f32 %v1165_v40, %v1207_v42  ;;  %v1275_v16 = vsub.f32 0.0, %v1259_v5 }
 0x1ee   : > { %1626 = vrot.lane.b32.xlu1 %v3513_v31, %s3228_s17  ;;  %1624 = vrot.lane.b32.xlu0 %v3505_v27, %s3228_s17  ;;  %v1256_v27 = vand.u32 2147483647, %v3802_v52  ;;  %v1258_v43 = vand.u32 2147483647, %v3809_v0  ;;  %3108 = vpow2.f32 %v1290_v3  ;;  %vm1354_vm10 = vcmp.ge.f32.partialorder %v3809_v0, 0.0 }
 0x1ef   : > { %v1261_v49 = vand.u32 2147483647, %v3822_v9  ;;  %3110 = vpow2.f32 %v1294_v13  ;;  %v1298_v26 = vmul.f32 1.442695, %v1275_v16  ;;  %v3850_v33 = vpop.eup %3102  ;;  %vm1357_vm11 = vcmp.ge.f32.partialorder %v3822_v9, 0.0 }
 0x1f0   : > { %v1211_v58 = vpop.permute.xlu1 %1210  ;;  %v1209_v31 = vpop.permute.xlu0 %1208  ;;  %v1272_v44 = vsub.f32 0.0, %v1256_v27  ;;  %v1274_v20 = vsub.f32 0.0, %v1258_v43  ;;  %v1316_v32 = vadd.f32 1.0, %v3850_v33 }
 0x1f1   : > { %v3835_v23 = vsub.f32 %v1167_v10, %v1211_v58  ;;  %v1277_v35 = vsub.f32 0.0, %v1261_v49 }
 0x1f2   : > { %1630 = vrot.lane.b32.xlu1 %v3525_v39, %s3228_s17  ;;  %1628 = vrot.lane.b32.xlu0 %v3528_v41, %s3228_s17  ;;  %v3828_v41 = vsub.f32 %v1164_v2, %v1205_v46  ;;  %v1292_v51 = vmul.f32 1.442695, %v1272_v44 }
 0x1f3   : > { %v1263_v36 = vand.u32 2147483647, %v3835_v23  ;;  %v3863_v42 = vpop.eup %3104  ;;  %vm1359_vm13 = vcmp.ge.f32.partialorder %v3835_v23, 0.0 }
 0x1f4   : > { %v1215_v6 = vpop.permute.xlu1 %1214  ;;  %v1213_v39 = vpop.permute.xlu0 %1212  ;;  %v1260_v24 = vand.u32 2147483647, %v3828_v41  ;;  %3112 = vpow2.f32 %v1292_v51  ;;  %v1317_v57 = vadd.f32 1.0, %v3863_v42  ;;  %vm1356_vm12 = vcmp.ge.f32.partialorder %v3828_v41, 0.0 }
 0x1f5   : > { %v3866_v46 = vsub.f32 %v1168_v25, %v1213_v39  ;;  %3114 = vpow2.f32 %v1298_v26  ;;  %v1279_v58 = vsub.f32 0.0, %v1263_v36 }
 0x1f6   : > { %1634 = vrot.lane.b32.xlu1 %v3538_v48, %s3228_s17  ;;  %1632 = vrot.lane.b32.xlu0 %v3543_v50, %s3228_s17  ;;  %v1169_v48 = vadd.f32 %v3581_v7, %v3690_v53  ;;  %v3842_v50 = vsub.f32 %v1166_v11, %v1209_v31  ;;  %v1296_v53 = vmul.f32 1.442695, %v1274_v20  ;;  %v1276_v45 = vsub.f32 0.0, %v1260_v24 }
 0x1f7   : > { %v1264_v1 = vand.u32 2147483647, %v3866_v46  ;;  %vm1360_vm0 = vcmp.ge.f32.partialorder %v3866_v46, 0.0 }
 0x1f8   : > { %v1219_v17 = vpop.permute.xlu1 %1218  ;;  %v1217_v21 = vpop.permute.xlu0 %1216  ;;  %v3855_v37 = vsub.f32 %v1169_v48, %v1215_v6  ;;  %v1262_v34 = vand.u32 2147483647, %v3842_v50  ;;  %3116 = vpow2.f32 %v1296_v53  ;;  %v1306_v6 = vmul.f32 1.442695, %v1279_v58 }
 0x1f9   : > { %v3881_v40 = vsub.f32 %v1171_v55, %v1219_v17  ;;  %3118 = vrcp.f32 %v1316_v32  ;;  %v1280_v10 = vsub.f32 0.0, %v1264_v1  ;;  %vm1358_vm14 = vcmp.ge.f32.partialorder %v3842_v50, 0.0 }
 0x1fa   : > { %1638 = vrot.lane.b32.xlu1 %v3556_v54, %s3228_s17  ;;  %1636 = vrot.lane.b32.xlu0 %v3562_v56, %s3228_s17  ;;  %v1170_v56 = vadd.f32 %v3600_v15, %v3714_v63  ;;  %v3873_v63 = vpop.eup %3106  ;;  %v1265_v60 = vand.u32 2147483647, %v3855_v37  ;;  %v1278_v31 = vsub.f32 0.0, %v1262_v34  ;;  %vm1361_vm15 = vcmp.ge.f32.partialorder %v3855_v37, 0.0 }
 0x1fb   : > { %v3877_v30 = vpop.eup %3108  ;;  %v1318_v2 = vadd.f32 1.0, %v3873_v63  ;;  %v1267_v39 = vand.u32 2147483647, %v3881_v40  ;;  %v1308_v48 = vmul.f32 1.442695, %v1280_v10  ;;  %vm1363_vm1 = vcmp.ge.f32.partialorder %v3881_v40, 0.0 }
 0x1fc   : > { %v3848_v28 = vpop.permute.xlu1 %1430  ;;  %v3852_v54 = vpop.permute.xlu0 %1428  ;;  %v3886_v27 = vsub.f32 %v1170_v56, %v1217_v21  ;;  %v1319_v4 = vadd.f32 1.0, %v3877_v30  ;;  %v1281_v43 = vsub.f32 0.0, %v1265_v60 }
 0x1fd   : > { %v1283_v49 = vsub.f32 0.0, %v1267_v39 }
 0x1fe   : > { %1642 = vrot.lane.b32.xlu1 %v3567_v59, %s3228_s17  ;;  %1640 = vrot.lane.b32.xlu0 %v3572_v62, %s3228_s17  ;;  %v1302_v59 = vmul.f32 1.442695, %v1277_v35  ;;  %v1300_v62 = vmul.f32 1.442695, %v1276_v45  ;;  %v1266_v44 = vand.u32 2147483647, %v3886_v27 }
 0x1ff   : > { %v1314_v35 = vmul.f32 1.442695, %v1283_v49 }
 0x200   : > { %v3871_v61 = vpop.permute.xlu1 %1434  ;;  %v3875_v47 = vpop.permute.xlu0 %1432  ;;  %3120 = vpow2.f32 %v1302_v59 }
 0x201   : > { %3122 = vrcp.f32 %v1317_v57 }
 0x202   : > { %1646 = vrot.lane.b32.xlu1 %v3581_v7, %s3228_s17  ;;  %1644 = vrot.lane.b32.xlu0 %v3584_v8, %s3228_s17  ;;  %v3896_v7 = vpop.eup %3110  ;;  %3124 = vpow2.f32 %v1300_v62  ;;  %v1304_v8 = vmul.f32 1.442695, %v1278_v31 }
 0x203   : > { %3126 = vrcp.f32 %v1318_v2  ;;  %v3906_v13 = vpop.eup %3112  ;;  %v1321_v16 = vadd.f32 1.0, %v3896_v7 }
 0x204   : > { %v3891_v3 = vpop.permute.xlu1 %1438  ;;  %v3894_v5 = vpop.permute.xlu0 %1436  ;;  %3128 = vrcp.f32 %v1319_v4  ;;  %v1320_v51 = vadd.f32 1.0, %v3906_v13 }
 0x205   : > { %v3911_v20 = vpop.eup %3114  ;;  %3130 = vpow2.f32 %v1306_v6 }
 0x206   : > { %1650 = vrot.lane.b32.xlu1 %v3595_v12, %s3228_s17  ;;  %1648 = vrot.lane.b32.xlu0 %v3600_v15, %s3228_s17  ;;  %v1310_v12 = vmul.f32 1.442695, %v1281_v43  ;;  %v3913_v21 = vpop.eup %3116  ;;  %3132 = vpow2.f32 %v1304_v8  ;;  %v1282_v15 = vsub.f32 0.0, %v1266_v44  ;;  %v1323_v25 = vadd.f32 1.0, %v3911_v20 }
 0x207   : > { %3134 = vrcp.f32 %v1321_v16  ;;  %v3119_v53 = vpop.eup %3118  ;;  %v1322_v45 = vadd.f32 1.0, %v3913_v21 }
 0x208   : > { %v3904_v11 = vpop.permute.xlu1 %1442  ;;  %v3909_v17 = vpop.permute.xlu0 %1440  ;;  %3136 = vpow2.f32 %v1310_v12  ;;  %v1312_v55 = vmul.f32 1.442695, %v1282_v15  ;;  %v1364_v62 = vmul.f32 %v3119_v53, %v3850_v33 }
 0x209   : > { %3138 = vpow2.f32 %v1308_v48 }
 0x20a   : > { %v3921_v36 = vpop.eup %3120  ;;  %3140 = vrcp.f32 %v1320_v51  ;;  %v3945_v8 = vsel %vm1348_vm3, %v1364_v62, %v3119_v53  ;;  %vm1362_vm3 = vcmp.ge.f32.partialorder %v3886_v27, 0.0 }
 0x20b   : > { %v3123_v56 = vpop.eup %3122  ;;  %3142 = vrcp.f32 %v1323_v25  ;;  %v1325_v60 = vadd.f32 1.0, %v3921_v36 }
 0x20c   : > { %v3916_v24 = vpop.permute.xlu1 %1446  ;;  %v3919_v26 = vpop.permute.xlu0 %1444  ;;  %3144 = vpow2.f32 %v1314_v35  ;;  %v1365_v2 = vmul.f32 %v3123_v56, %v3863_v42 }
 0x20d   : > { %v3926_v32 = vpop.eup %3124  ;;  %3146 = vpow2.f32 %v1312_v55 }
 0x20e   : > { %v3127_v57 = vpop.eup %3126  ;;  %3148 = vrcp.f32 %v1322_v45  ;;  %v1324_v1 = vadd.f32 1.0, %v3926_v32  ;;  %v3951_v16 = vsel %vm1349_vm4, %v1365_v2, %v3123_v56  ;;  %vm2503_vm4 = vcmask 7168  }
 0x20f   : > { %v3129_v58 = vpop.eup %3128  ;;  %3150 = vrcp.f32 %v1325_v60  ;;  %v1366_v10 = vmul.f32 %v3127_v57, %v3873_v63  ;;  %v1476_v63 = vmul.f32 %v3852_v54, %v3945_v8 }
 0x210   : > { %v3924_v34 = vpop.permute.xlu1 %1450  ;;  %v3928_v59 = vpop.permute.xlu0 %1448  ;;  %3152 = vrcp.f32 %v1324_v1  ;;  %v1367_v12 = vmul.f32 %v3129_v58, %v3877_v30  ;;  %v1477_v30 = vmul.f32 %v3848_v28, %v3951_v16 }
 0x211   : > { %v3932_v31 = vpop.eup %3130  ;;  %v3967_v25 = vsel %vm1350_vm5, %v1366_v10, %v3127_v57 }
 0x212   : > { %v3938_v6 = vpop.eup %3132  ;;  %v1327_v33 = vadd.f32 1.0, %v3932_v31  ;;  %v3972_v18 = vsel %vm1351_vm6, %v1367_v12, %v3129_v58  ;;  %v1478_v62 = vmul.f32 %v3875_v47, %v3967_v25 }
 0x213   : > { %v3135_v39 = vpop.eup %3134  ;;  %v1326_v42 = vadd.f32 1.0, %v3938_v6 }
 0x214   : > { %v3936_v4 = vpop.permute.xlu1 %1454  ;;  %v3940_v43 = vpop.permute.xlu0 %1452  ;;  %3154 = vrcp.f32 %v1327_v33  ;;  %v1369_v22 = vmul.f32 %v3135_v39, %v3896_v7  ;;  %v1479_v7 = vmul.f32 %v3871_v61, %v3972_v18 }
 0x215   : > { %v3948_v44 = vpop.eup %3136  ;;  %3156 = vrcp.f32 %v1326_v42 }
 0x216   : > { %v3956_v19 = vpop.eup %3138  ;;  %v1329_v51 = vadd.f32 1.0, %v3948_v44  ;;  %v3991_v1 = vsel %vm1353_vm7, %v1369_v22, %v3135_v39 }
 0x217   : > { %v3141_v48 = vpop.eup %3140  ;;  %v1328_v35 = vadd.f32 1.0, %v3956_v19 }
 0x218   : > { %v3954_v14 = vpop.permute.xlu1 %1458  ;;  %v3958_v49 = vpop.permute.xlu0 %1456  ;;  %v1368_v56 = vmul.f32 %v3141_v48, %v3906_v13  ;;  %3158 = vrcp.f32 %v1329_v51 }
 0x219   : > { %v3143_v15 = vpop.eup %3142  ;;  %3160 = vrcp.f32 %v1328_v35 }
 0x21a   : > { %v3969_v53 = vpop.eup %3144  ;;  %v1371_v29 = vmul.f32 %v3143_v15, %v3911_v20  ;;  %v3995_v33 = vsel %vm1352_vm8, %v1368_v56, %v3141_v48  ;;  %v1481_v20 = vmul.f32 %v3891_v3, %v3991_v1 }
 0x21b   : > { %v3975_v54 = vpop.eup %3146  ;;  %v1331_v58 = vadd.f32 1.0, %v3969_v53  ;;  %v1480_v39 = vmul.f32 %v3894_v5, %v3995_v33 }
 0x21c   : > { %v1495_v55 = vpop.permute.xlu1 %1494  ;;  %v1493_v60 = vpop.permute.xlu0 %1492  ;;  %v1330_v13 = vadd.f32 1.0, %v3975_v54  ;;  %v4008_v48 = vsel %vm1355_vm9, %v1371_v29, %v3143_v15 }
 0x21d   : > { %v3978_v45 = vadd.f32 %v1495_v55, %v1477_v30  ;;  %v3149_v28 = vpop.eup %3148  ;;  %v3982_v57 = vadd.f32 %v1493_v60, %v1476_v63  ;;  %3162 = vrcp.f32 %v1331_v58  ;;  %v1483_v5 = vmul.f32 %v3904_v11, %v4008_v48 }
 0x21e   : > { %v3151_v2 = vpop.eup %3150  ;;  %v1370_v61 = vmul.f32 %v3149_v28, %v3913_v21  ;;  %3164 = vrcp.f32 %v1330_v13 }
 0x21f   : > { %1837 = vperm.xlu1 %3095, %v3978_v45   ;;  %1832 = vperm.xlu0 %3094, %v3982_v57   ;;  %v3153_v42 = vpop.eup %3152  ;;  %v1373_v21 = vmul.f32 %v3151_v2, %v3921_v36 }
 0x220   : > { %v1499_v52 = vpop.permute.xlu1 %1498  ;;  %v1497_v47 = vpop.permute.xlu0 %1496  ;;  %v4013_v51 = vsel %vm1354_vm10, %v1370_v61, %v3149_v28  ;;  %v1372_v0 = vmul.f32 %v3153_v42, %v3926_v32 }
 0x221   : > { %v3998_v10 = vadd.f32 %v1499_v52, %v1479_v7  ;;  %v4000_v12 = vadd.f32 %v1497_v47, %v1478_v62  ;;  %v3155_v38 = vpop.eup %3154  ;;  %v1482_v36 = vmul.f32 %v3909_v17, %v4013_v51  ;;  %v4026_v15 = vsel %vm1357_vm11, %v1373_v21, %v3151_v2 }
 0x222   : > { %v3157_v35 = vpop.eup %3156  ;;  %v1375_v32 = vmul.f32 %v3155_v38, %v3932_v31  ;;  %v4031_v60 = vsel %vm1356_vm12, %v1372_v0, %v3153_v42  ;;  %v1485_v17 = vmul.f32 %v3916_v24, %v4026_v15 }
 0x223   : > { %1847 = vperm.xlu0 %3094, %v3998_v10   ;;  %1842 = vperm.xlu1 %3095, %v4000_v12   ;;  %v3159_v56 = vpop.eup %3158  ;;  %v1374_v9 = vmul.f32 %v3157_v35, %v3938_v6  ;;  %v1484_v31 = vmul.f32 %v3919_v26, %v4031_v60 }
 0x224   : > { %v1503_v63 = vpop.permute.xlu1 %1502  ;;  %v1501_v3 = vpop.permute.xlu0 %1500  ;;  %v4044_v7 = vsel %vm1359_vm13, %v1375_v32, %v3155_v38  ;;  %v1377_v6 = vmul.f32 %v3159_v56, %v3948_v44 }
 0x225   : > { %v4016_v30 = vadd.f32 %v1503_v63, %v1481_v20  ;;  %v4018_v22 = vadd.f32 %v1501_v3, %v1480_v39  ;;  %v3161_v28 = vpop.eup %3160  ;;  %v4049_v29 = vsel %vm1358_vm14, %v1374_v9, %v3157_v35  ;;  %v1487_v26 = vmul.f32 %v3924_v34, %v4044_v7 }
 0x226   : > { %v1376_v23 = vmul.f32 %v3161_v28, %v3956_v19  ;;  %v1486_v44 = vmul.f32 %v3928_v59, %v4049_v29  ;;  %v4062_v61 = vsel %vm1361_vm15, %v1377_v6, %v3159_v56 }
 0x227   : > { %1857 = vperm.xlu0 %3094, %v4016_v30   ;;  %1852 = vperm.xlu1 %3095, %v4018_v22   ;;  %v3163_v13 = vpop.eup %3162  ;;  %v1489_v59 = vmul.f32 %v3936_v4, %v4062_v61 }
 0x228   : > { %v1507_v55 = vpop.permute.xlu1 %1506  ;;  %v1505_v41 = vpop.permute.xlu0 %1504  ;;  %v1379_v19 = vmul.f32 %v3163_v13, %v3969_v53  ;;  %v4067_v42 = vsel %vm1360_vm0, %v1376_v23, %v3161_v28 }
 0x229   : > { %v4034_v11 = vadd.f32 %v1507_v55, %v1483_v5  ;;  %v4036_v58 = vadd.f32 %v1505_v41, %v1482_v36  ;;  %v3165_v52 = vpop.eup %3164  ;;  %v1488_v53 = vmul.f32 %v3940_v43, %v4067_v42 }
 0x22a   : > { %v1378_v37 = vmul.f32 %v3165_v52, %v3975_v54  ;;  %v4080_v39 = vsel %vm1363_vm1, %v1379_v19, %v3163_v13 }
 0x22b   : > { %1867 = vperm.xlu0 %3094, %v4034_v11   ;;  %1862 = vperm.xlu1 %3095, %v4036_v58   ;;  %v1491_v27 = vmul.f32 %v3954_v14, %v4080_v39 }
 0x22c   : > { %v1511_v62 = vpop.permute.xlu1 %1510  ;;  %v1509_v50 = vpop.permute.xlu0 %1508  ;;  %v4084_v21 = vsel %vm1362_vm3, %v1378_v37, %v3165_v52 }
 0x22d   : > { %v4052_v24 = vadd.f32 %v1511_v62, %v1485_v17  ;;  %v4054_v2 = vadd.f32 %v1509_v50, %v1484_v31  ;;  %v1490_v4 = vmul.f32 %v3958_v49, %v4084_v21 }
 0x22f   : > { %1877 = vperm.xlu0 %3094, %v4052_v24   ;;  %1872 = vperm.xlu1 %3095, %v4054_v2  }
 0x230   : > { %v1515_v47 = vpop.permute.xlu1 %1514  ;;  %v1513_v34 = vpop.permute.xlu0 %1512 }
 0x231   : > { %v4070_v20 = vadd.f32 %v1515_v47, %v1487_v26  ;;  %v4072_v46 = vadd.f32 %v1513_v34, %v1486_v44 }
 0x233   : > { %1887 = vperm.xlu0 %3094, %v4070_v20   ;;  %1882 = vperm.xlu1 %3095, %v4072_v46  }
 0x234   : > { %v1519_v54 = vpop.permute.xlu1 %1518  ;;  %v1517_v40 = vpop.permute.xlu0 %1516 }
 0x235   : > { %v4086_v63 = vadd.f32 %v1519_v54, %v1489_v59  ;;  %v4088_v38 = vadd.f32 %v1517_v40, %v1488_v53  ;;  %v1397_v54 = vsub.f32 1.0, %v3951_v16 }
 0x237   : > { %1897 = vperm.xlu0 %3094, %v4086_v63   ;;  %1892 = vperm.xlu1 %3095, %v4088_v38  }
 0x238   : > { %v1523_v43 = vpop.permute.xlu1 %1522  ;;  %v1521_v3 = vpop.permute.xlu0 %1520 }
 0x239   : > { %v4096_v0 = vadd.f32 %v1523_v43, %v1491_v27  ;;  %v4098_v35 = vadd.f32 %v1521_v3, %v1490_v4  ;;  %v1396_v4 = vsub.f32 1.0, %v3945_v8 }
 0x23b   : > { %1907 = vperm.xlu0 %3094, %v4096_v0   ;;  %1902 = vperm.xlu1 %3095, %v4098_v35  }
 0x23c   : > { %v1559_v5 = vpop.permute.xlu1 %1558  ;;  %v1557_v36 = vpop.permute.xlu0 %1556 }
 0x240   : > { %v1563_v14 = vpop.permute.xlu1 %1562  ;;  %v1561_v32 = vpop.permute.xlu0 %1560 }
 0x244   : > { %v1567_v55 = vpop.permute.xlu1 %1566  ;;  %v1565_v49 = vpop.permute.xlu0 %1564 }
 0x247   : > { %v4108_v17 = vpop.f32.mrb[0].mxu0  ;;  %v4110_v31 = vpop.f32.mrb[0].mxu1 }
 0x248   : > { %v1571_v56 = vpop.permute.xlu1 %1570  ;;  %v4102_v9 = vpop.permute.xlu0 %1568  ;;  %4584 = vst [vmem:[#allocation6_spill] sm:$0xff] %v4110_v31 }
 0x249   : > { %v4114_v62 = vpop.f32.mrb[1].mxu0  ;;  %v4122_v52 = vpop.f32.mrb[1].mxu1 }
 0x24a   : > { %v4118_v23 = vpop.f32.mrb[2].mxu0  ;;  %4586 = vst [vmem:[#allocation8_spill] sm:$0xff] %v4122_v52  ;;  %v4124_v26 = vpop.f32.mrb[2].mxu1 }
 0x24b   : > { %4585 = vst [vmem:[#allocation7_spill] sm:$0xff] %v4118_v23  ;;  %v4120_v50 = vpop.f32.mrb[3].mxu0  ;;  %4587 = vst [vmem:[#allocation9_spill] sm:$0xff] %v4124_v26  ;;  %v4128_v19 = vpop.f32.mrb[3].mxu1  ;;  %v1605_v26 = vmul.f32 %v1559_v5, %v1397_v54 }
 0x24c   : > { %v4104_v41 = vpop.permute.xlu1 %1574  ;;  %v4106_v28 = vpop.permute.xlu0 %1572  ;;  %4588 = vst [vmem:[#allocation10_spill] sm:$0xff] %v4128_v19 }
 0x24f   : > { %v4132_v37 = vpop.f32.mrb[4].mxu0  ;;  %v4134_v34 = vpop.f32.mrb[4].mxu1 }
 0x250   : > { %v4112_v6 = vpop.permute.xlu1 %1578  ;;  %v4116_v13 = vpop.permute.xlu0 %1576  ;;  %4589 = vst [vmem:[#allocation11_spill] sm:$0xff] %v4132_v37  ;;  %4590 = vst [vmem:[#allocation12_spill] sm:$0xff] %v4134_v34  ;;  %v1604_v34 = vmul.f32 %v1557_v36, %v1396_v4  ;;  %v1399_v37 = vsub.f32 1.0, %v3972_v18  ;;  %v1401_v18 = vsub.f32 1.0, %v3991_v1 }
 0x251   : > { %v4138_v53 = vpop.f32.mrb[5].mxu0  ;;  %v4148_v3 = vpop.f32.mrb[5].mxu1 }
 0x252   : > { %4591 = vst [vmem:[#allocation13_spill] sm:$0xff] %v4138_v53  ;;  %v4143_v27 = vpop.f32.mrb[6].mxu0  ;;  %4593 = vst [vmem:[#allocation15_spill] sm:$0xff] %v4148_v3  ;;  %v4150_v31 = vpop.f32.mrb[6].mxu1  ;;  %v1607_v8 = vmul.f32 %v1563_v14, %v1399_v37 }
 0x253   : > { %4592 = vst [vmem:[#allocation14_spill] sm:$0xff] %v4143_v27  ;;  %v4146_v43 = vpop.f32.mrb[7].mxu0  ;;  %4594 = vst [vmem:[#allocation16_spill] sm:$0xff] %v4150_v31  ;;  %v4152_v52 = vpop.f32.mrb[7].mxu1  ;;  %v1398_v27 = vsub.f32 1.0, %v3967_v25  ;;  %v1400_v25 = vsub.f32 1.0, %v3995_v33 }
 0x254   : > { %v4126_v44 = vpop.permute.xlu1 %1582  ;;  %v4130_v47 = vpop.permute.xlu0 %1580  ;;  %4595 = vst [vmem:[#allocation17_spill] sm:$0xff] %v4152_v52 }
 0x255   : > { %v1606_v5 = vmul.f32 %v1561_v32, %v1398_v27 }
 0x257   : > { %v4161_v3 = vpop.f32.mrb[8].mxu1  ;;  %v4177_v32 = vpop.f32.mrb[8].mxu0 }
 0x258   : > { %v4136_v59 = vpop.permute.xlu1 %1586  ;;  %v4141_v40 = vpop.permute.xlu0 %1584 }
 0x259   : > { %v4164_v54 = vpop.f32.mrb[9].mxu1  ;;  %v4180_v27 = vpop.f32.mrb[9].mxu0 }
 0x25a   : > { %v4169_v4 = vpop.f32.mrb[10].mxu1 }
 0x25b   : > { %v4174_v37 = vpop.f32.mrb[11].mxu1 }
 0x25c   : > { %v1623_v19 = vpop.permute.xlu1 %1622  ;;  %v1621_v53 = vpop.permute.xlu0 %1620 }
 0x25d   : > { %v4155_v16 = vadd.f32 %v1623_v19, %v1605_v26  ;;  %v4158_v23 = vadd.f32 %v1621_v53, %v1604_v34  ;;  %v1609_v34 = vmul.f32 %v1567_v55, %v1401_v18  ;;  %v1608_v53 = vmul.f32 %v1565_v49, %v1400_v25  ;;  %v4189_v18 = vpop.f32.mrb[10].mxu0 }
 0x25e   : > { %v4193_v31 = vpop.f32.mrb[11].mxu0 }
 0x25f   : > { %2078 = vperm.xlu0 %3094, %v4155_v16   ;;  %2073 = vperm.xlu1 %3095, %v4158_v23  }
 0x260   : > { %v1627_v36 = vpop.permute.xlu1 %1626  ;;  %v1625_v19 = vpop.permute.xlu0 %1624 }
 0x261   : > { %v4167_v26 = vadd.f32 %v1627_v36, %v1607_v8  ;;  %v4172_v14 = vadd.f32 %v1625_v19, %v1606_v5  ;;  %v1403_v8 = vsub.f32 1.0, %v4008_v48  ;;  %v1402_v5 = vsub.f32 1.0, %v4013_v51  ;;  %v4198_v51 = vpop.f32.mrb[12].mxu1 }
 0x262   : > { %v1405_v48 = vsub.f32 1.0, %v4026_v15  ;;  %4596 = vst [vmem:[#allocation18_spill] sm:$0xff] %v4198_v51 }
 0x263   : > { %2088 = vperm.xlu0 %3094, %v4167_v26   ;;  %2083 = vperm.xlu1 %3095, %v4172_v14   ;;  %v1611_v55 = vmul.f32 %v1571_v56, %v1403_v8  ;;  %v1610_v49 = vmul.f32 %v4102_v9, %v1402_v5  ;;  %v1404_v56 = vsub.f32 1.0, %v4031_v60  ;;  %v4203_v8 = vpop.f32.mrb[13].mxu1 }
 0x264   : > { %v1631_v1 = vpop.permute.xlu1 %1630  ;;  %v1629_v33 = vpop.permute.xlu0 %1628  ;;  %v1613_v9 = vmul.f32 %v4104_v41, %v1405_v48  ;;  %v1406_v41 = vsub.f32 1.0, %v4049_v29 }
 0x265   : > { %v4183_v36 = vadd.f32 %v1631_v1, %v1609_v34  ;;  %v4186_v19 = vadd.f32 %v1629_v33, %v1608_v53  ;;  %v4207_v33 = vpop.f32.mrb[14].mxu1  ;;  %v1612_v5 = vmul.f32 %v4106_v28, %v1404_v56 }
 0x266   : > { %v1614_v51 = vmul.f32 %v4116_v13, %v1406_v41 }
 0x267   : > { %2098 = vperm.xlu0 %3094, %v4183_v36   ;;  %2093 = vperm.xlu1 %3095, %v4186_v19  }
 0x268   : > { %v1635_v25 = vpop.permute.xlu1 %1634  ;;  %v1633_v1 = vpop.permute.xlu0 %1632 }
 0x269   : > { %v4196_v34 = vadd.f32 %v1635_v25, %v1611_v55  ;;  %v4201_v53 = vadd.f32 %v1633_v1, %v1610_v49  ;;  %v4211_v55 = vpop.f32.mrb[15].mxu1  ;;  %v1407_v25 = vsub.f32 1.0, %v4044_v7  ;;  %v4216_v1 = vpop.f32.mrb[12].mxu0 }
 0x26a   : > { %4597 = vst [vmem:[#allocation19_spill] sm:$0xff] %v4216_v1  ;;  %v4221_v52 = vpop.f32.mrb[13].mxu0 }
 0x26b   : > { %2108 = vperm.xlu0 %3094, %v4196_v34   ;;  %2103 = vperm.xlu1 %3095, %v4201_v53   ;;  %v1615_v28 = vmul.f32 %v4112_v6, %v1407_v25  ;;  %v4225_v56 = vpop.f32.mrb[14].mxu0  ;;  %v1408_v6 = vsub.f32 1.0, %v4067_v42 }
 0x26c   : > { %v1639_v15 = vpop.permute.xlu1 %1638  ;;  %v1637_v49 = vpop.permute.xlu0 %1636  ;;  %4598 = vst [vmem:[#allocation20_spill] sm:$0xff] %v4225_v56 }
 0x26d   : > { %v4214_v60 = vadd.f32 %v1639_v15, %v1613_v9  ;;  %v4219_v48 = vadd.f32 %v1637_v49, %v1612_v5  ;;  %v4229_v9 = vpop.f32.mrb[15].mxu0  ;;  %v1409_v15 = vsub.f32 1.0, %v4062_v61  ;;  %v4234_v49 = vpop.f32.mrb[16].mxu1  ;;  %v1616_v56 = vmul.f32 %v4130_v47, %v1408_v6 }
 0x26e   : > { %4599 = vst [vmem:[#allocation21_spill] sm:$0xff] %v4234_v49  ;;  %v4239_v1 = vpop.f32.mrb[17].mxu1  ;;  %v1410_v49 = vsub.f32 1.0, %v4084_v21 }
 0x26f   : > { %2118 = vperm.xlu0 %3094, %v4214_v60   ;;  %2113 = vperm.xlu1 %3095, %v4219_v48   ;;  %4600 = vst [vmem:[#allocation22_spill] sm:$0xff] %v4239_v1  ;;  %v1617_v13 = vmul.f32 %v4126_v44, %v1409_v15  ;;  %v4243_v41 = vpop.f32.mrb[18].mxu1 }
 0x270   : > { %v1643_v7 = vpop.permute.xlu1 %1642  ;;  %v1641_v5 = vpop.permute.xlu0 %1640  ;;  %4601 = vst [vmem:[#allocation23_spill] sm:$0xff] %v4243_v41  ;;  %v1618_v6 = vmul.f32 %v4141_v40, %v1410_v49 }
 0x271   : > { %v4232_v29 = vadd.f32 %v1643_v7, %v1615_v28  ;;  %v4237_v25 = vadd.f32 %v1641_v5, %v1614_v51  ;;  %v4247_v28 = vpop.f32.mrb[19].mxu1  ;;  %v1411_v7 = vsub.f32 1.0, %v4080_v39  ;;  %v4250_v5 = vpop.f32.mrb[16].mxu0 }
 0x272   : > { %4602 = vst [vmem:[#allocation24_spill] sm:$0xff] %v4247_v28  ;;  %4603 = vst [vmem:[#allocation25_spill] sm:$0xff] %v4250_v5  ;;  %v4253_v15 = vpop.f32.mrb[17].mxu0 }
 0x273   : > { %2128 = vperm.xlu0 %3094, %v4232_v29   ;;  %2123 = vperm.xlu1 %3095, %v4237_v25   ;;  %v1619_v41 = vmul.f32 %v4136_v59, %v1411_v7  ;;  %v4256_v47 = vpop.f32.mrb[18].mxu0 }
 0x274   : > { %v1647_v61 = vpop.permute.xlu1 %1646  ;;  %v1645_v51 = vpop.permute.xlu0 %1644 }
 0x275   : > { %v1681_v42 = vadd.f32 %v1647_v61, %v1617_v13  ;;  %v1680_v44 = vadd.f32 %v1645_v51, %v1616_v56  ;;  %v4259_v28 = vpop.f32.mrb[19].mxu0  ;;  %v4261_v61 = vpop.f32.mrb[20].mxu1 }
 0x276   : > { %v4263_v21 = vpop.f32.mrb[21].mxu1  ;;  %v4269_v7 = vpop.f32.mrb[20].mxu0 }
 0x277   : > { %2138 = vperm.xlu0 %3094, %v1681_v42   ;;  %2133 = vperm.xlu1 %3095, %v1680_v44   ;;  %v4265_v56 = vpop.f32.mrb[22].mxu1  ;;  %v4271_v40 = vpop.f32.mrb[21].mxu0 }
 0x278   : > { %v1651_v1 = vpop.permute.xlu1 %1650  ;;  %v1649_v13 = vpop.permute.xlu0 %1648 }
 0x279   : > { %v1683_v39 = vadd.f32 %v1651_v1, %v1619_v41  ;;  %v1682_v5 = vadd.f32 %v1649_v13, %v1618_v6  ;;  %v4267_v59 = vpop.f32.mrb[23].mxu1  ;;  %v4274_v1 = vpop.f32.mrb[22].mxu0 }
 0x27a   : > { %v4277_v49 = vpop.f32.mrb[23].mxu0 }
 0x27b   : > { %2148 = vperm.xlu0 %3094, %v1683_v39   ;;  %2143 = vperm.xlu1 %3095, %v1682_v5  }
 0x27f   : > { %2457 = vrot.lane.b32.xlu0 %v3978_v45, %s3229_s19  ;;  %2455 = vrot.lane.b32.xlu1 %v3982_v57, %s3229_s19 }
 0x283   : > { %2461 = vrot.lane.b32.xlu0 %v3998_v10, %s3229_s19  ;;  %2459 = vrot.lane.b32.xlu1 %v4000_v12, %s3229_s19 }
 0x287   : > { %2465 = vrot.lane.b32.xlu0 %v4016_v30, %s3229_s19  ;;  %2463 = vrot.lane.b32.xlu1 %v4018_v22, %s3229_s19 }
 0x28b   : > { %2469 = vrot.lane.b32.xlu0 %v4034_v11, %s3229_s19  ;;  %2467 = vrot.lane.b32.xlu1 %v4036_v58, %s3229_s19 }
 0x28f   : > { %2473 = vrot.lane.b32.xlu0 %v4052_v24, %s3229_s19  ;;  %2471 = vrot.lane.b32.xlu1 %v4054_v2, %s3229_s19 }
 0x293   : > { %2477 = vrot.lane.b32.xlu0 %v4070_v20, %s3229_s19  ;;  %2475 = vrot.lane.b32.xlu1 %v4072_v46, %s3229_s19 }
 0x297   : > { %2481 = vrot.lane.b32.xlu0 %v4086_v63, %s3229_s19  ;;  %2479 = vrot.lane.b32.xlu1 %v4088_v38, %s3229_s19 }
 0x29b   : > { %2485 = vrot.lane.b32.xlu0 %v4096_v0, %s3229_s19  ;;  %2483 = vrot.lane.b32.xlu1 %v4098_v35, %s3229_s19 }
 0x29e   : > { %v1833_v45 = vpop.permute.xlu0 %1832  ;;  %v1838_v57 = vpop.permute.xlu1 %1837 }
 0x29f   : > { %2522 = vrot.lane.b32.xlu0 %v4155_v16, %s3230_s20  ;;  %2520 = vrot.lane.b32.xlu1 %v4158_v23, %s3230_s20  ;;  %v4320_v23 = vld [vmem:[%s4580_s5] ss:$0 sm:$0xff] }
 0x2a2   : > { %v1848_v10 = vpop.permute.xlu0 %1847  ;;  %v1843_v12 = vpop.permute.xlu1 %1842 }
 0x2a3   : > { %2526 = vrot.lane.b32.xlu0 %v4167_v26, %s3230_s20  ;;  %2524 = vrot.lane.b32.xlu1 %v4172_v14, %s3230_s20  ;;  %v1911_v26 = vmul.f32 %v1838_v57, %v4120_v50  ;;  %v2350_v14 = vmul.f32 %v4320_v23, %v1838_v57  ;;  %v4605_v50 = vld [vmem:[#allocation13_spill] sm:$0xff] }
 0x2a6   : > { %v1858_v30 = vpop.permute.xlu0 %1857  ;;  %v1853_v22 = vpop.permute.xlu1 %1852 }
 0x2a7   : > { %2530 = vrot.lane.b32.xlu0 %v4183_v36, %s3230_s20  ;;  %2528 = vrot.lane.b32.xlu1 %v4186_v19, %s3230_s20  ;;  %v1910_v36 = vmul.f32 %v1833_v45, %v4114_v62  ;;  %v1914_v51 = vmul.f32 %v1853_v22, %v4605_v50  ;;  %v2353_v62 = vmul.f32 %v4320_v23, %v1853_v22 }
 0x2aa   : > { %v1868_v11 = vpop.permute.xlu0 %1867  ;;  %v1863_v58 = vpop.permute.xlu1 %1862 }
 0x2ab   : > { %2534 = vrot.lane.b32.xlu0 %v4196_v34, %s3230_s20  ;;  %2532 = vrot.lane.b32.xlu1 %v4201_v53, %s3230_s20  ;;  %v2349_v53 = vmul.f32 %v4320_v23, %v1833_v45  ;;  %v4343_v45 = vmul.f32 %v4320_v23, %v1863_v58 }
 0x2ae   : > { %v1878_v24 = vpop.permute.xlu0 %1877  ;;  %v1873_v2 = vpop.permute.xlu1 %1872 }
 0x2af   : > { %2538 = vrot.lane.b32.xlu0 %v4214_v60, %s3230_s20  ;;  %2536 = vrot.lane.b32.xlu1 %v4219_v48, %s3230_s20  ;;  %v1912_v60 = vmul.f32 %v4108_v17, %v1843_v12  ;;  %v2351_v48 = vmul.f32 %v4320_v23, %v1843_v12  ;;  %v4339_v17 = vld [vmem:[%s4580_s5 + $0x1] ss:$0 sm:$0xff] }
 0x2b2   : > { %v4305_v20 = vpop.permute.xlu0 %1887  ;;  %v4307_v46 = vpop.permute.xlu1 %1882 }
 0x2b3   : > { %2542 = vrot.lane.b32.xlu0 %v4232_v29, %s3230_s20  ;;  %2540 = vrot.lane.b32.xlu1 %v4237_v25, %s3230_s20  ;;  %v4604_v25 = vld [vmem:[#allocation7_spill] sm:$0xff] }
 0x2b4   : > { %v1913_v41 = vmul.f32 %v4604_v25, %v1848_v10 }
 0x2b6   : > { %v4309_v63 = vpop.permute.xlu0 %1897  ;;  %v4311_v38 = vpop.permute.xlu1 %1892 }
 0x2b7   : > { %2546 = vrot.lane.b32.xlu0 %v1681_v42, %s3230_s20  ;;  %2544 = vrot.lane.b32.xlu1 %v1680_v44, %s3230_s20  ;;  %v2352_v42 = vmul.f32 %v4320_v23, %v1848_v10  ;;  %v1915_v44 = vmul.f32 %v1858_v30, %v4146_v43  ;;  %v4607_v43 = vld [vmem:[#allocation14_spill] sm:$0xff] }
 0x2b8   : > { %v1917_v22 = vmul.f32 %v4607_v43, %v1868_v11 }
 0x2ba   : > { %v4313_v0 = vpop.permute.xlu0 %1907  ;;  %v4315_v35 = vpop.permute.xlu1 %1902 }
 0x2bb   : > { %2550 = vrot.lane.b32.xlu0 %v1683_v39, %s3230_s20  ;;  %2548 = vrot.lane.b32.xlu1 %v1682_v5, %s3230_s20  ;;  %v4606_v39 = vld [vmem:[#allocation11_spill] sm:$0xff] }
 0x2bc   : > { %v1916_v13 = vmul.f32 %v4606_v39, %v1863_v58 }
 0x2de   : > { %v2079_v16 = vpop.permute.xlu0 %2078  ;;  %v2074_v19 = vpop.permute.xlu1 %2073 }
 0x2df   : > { %v2152_v34 = vmul.f32 %v2079_v16, %v4174_v37  ;;  %v2151_v29 = vmul.f32 %v2074_v19, %v4164_v54  ;;  %v2354_v37 = vmul.f32 %v4320_v23, %v1858_v30  ;;  %v4349_v30 = vmul.f32 %v4320_v23, %v1868_v11  ;;  %v4364_v11 = vld [vmem:[%s4580_s5 + $0x2] ss:$0 sm:$0xff] }
 0x2e0   : > { %v2387_v58 = vmul.f32 %v4339_v17, %v2079_v16 }
 0x2e1   : > { %v2168_v5 = vadd.f32 %v2152_v34, %v1911_v26  ;;  %v2167_v6 = vadd.f32 %v2151_v29, %v1910_v36  ;;  %v4608_v34 = vld [vmem:[#allocation8_spill] sm:$0xff] }
 0x2e2   : > { %v2089_v54 = vpop.permute.xlu0 %2088  ;;  %v2084_v10 = vpop.permute.xlu1 %2083  ;;  %v4354_v29 = vmul.f32 %v1873_v2, %v4608_v34 }
 0x2e3   : > { %v2329_v57 = vadd.f32 %v4193_v31, %v2168_v5  ;;  %v2154_v12 = vmul.f32 %v4169_v4, %v2089_v54  ;;  %v2328_v26 = vadd.f32 %v4180_v27, %v2167_v6  ;;  %v2153_v36 = vmul.f32 %v4161_v3, %v2084_v10  ;;  %v4609_v6 = vld [vmem:[#allocation10_spill] sm:$0xff] }
 0x2e4   : > { %v4358_v31 = vmul.f32 %v4320_v23, %v1873_v2  ;;  %v2386_v4 = vmul.f32 %v4339_v17, %v2074_v19  ;;  %v1919_v39 = vmul.f32 %v1878_v24, %v4609_v6 }
 0x2e5   : > { %v2366_v25 = vadd.f32 %v2350_v14, %v2329_v57  ;;  %v2170_v50 = vadd.f32 %v2154_v12, %v1913_v41  ;;  %v2365_v5 = vadd.f32 %v2349_v53, %v2328_v26  ;;  %v2169_v27 = vadd.f32 %v2153_v36, %v1912_v60 }
 0x2e6   : > { %v2099_v3 = vpop.permute.xlu0 %2098  ;;  %v2094_v14 = vpop.permute.xlu1 %2093  ;;  %v4370_v41 = vmul.f32 %v4320_v23, %v1878_v24  ;;  %v2389_v26 = vmul.f32 %v4339_v17, %v2089_v54  ;;  %v4611_v54 = vld [vmem:[#allocation18_spill] sm:$0xff] }
 0x2e7   : > { %v2403_v43 = vadd.f32 %v2387_v58, %v2366_v25  ;;  %v2331_v16 = vadd.f32 %v4189_v18, %v2170_v50  ;;  %v2156_v2 = vmul.f32 %v2099_v3, %v4211_v55  ;;  %v2402_v19 = vadd.f32 %v2386_v4, %v2365_v5  ;;  %v4610_v25 = vld [vmem:[#allocation6_spill] sm:$0xff] }
 0x2e8   : > { %v2330_v53 = vadd.f32 %v4177_v32, %v2169_v27  ;;  %v2155_v57 = vmul.f32 %v2094_v14, %v4203_v8  ;;  %v2388_v55 = vmul.f32 %v4339_v17, %v2084_v10  ;;  %v1920_v50 = vmul.f32 %v4610_v25, %v4307_v46 }
 0x2e9   : > { %v2424_v60 = vadd.f32 %v4364_v11, %v2403_v43  ;;  %v2368_v12 = vadd.f32 %v2352_v42, %v2331_v16  ;;  %v2172_v36 = vadd.f32 %v2156_v2, %v1915_v44  ;;  %v2423_v18 = vadd.f32 %v4364_v11, %v2402_v19  ;;  %v4612_v19 = vld [vmem:[#allocation9_spill] sm:$0xff] }
 0x2ea   : > { %v2367_v34 = vadd.f32 %v2351_v48, %v2330_v53  ;;  %v2171_v58 = vadd.f32 %v2155_v57, %v1914_v51  ;;  %v2109_v24 = vpop.permute.xlu0 %2108  ;;  %v2104_v4 = vpop.permute.xlu1 %2103  ;;  %v4386_v44 = vmul.f32 %v4320_v23, %v4307_v46  ;;  %v2390_v43 = vmul.f32 %v4339_v17, %v2094_v14  ;;  %v4613_v57 = vld [vmem:[#allocation20_spill] sm:$0xff]  ;;  %v4616_v14 = vld [vmem:[#allocation22_spill] sm:$0xff] }
 0x2eb   : > { %2440 = vst.msk [vmem:[%s3393_s18 + $0x8] sm:$0xff] %vm1708_vm2, %v2424_v60  ;;  %v2405_v32 = vadd.f32 %v2389_v26, %v2368_v12  ;;  %v2333_v8 = vadd.f32 %v4229_v9, %v2172_v36  ;;  %v2158_v42 = vmul.f32 %v4207_v33, %v2109_v24  ;;  %2439 = vst.msk [vmem:[%s3393_s18] sm:$0xff] %vm1708_vm2, %v2423_v18  ;;  %v4614_v26 = vld [vmem:[#allocation24_spill] sm:$0xff] }
 0x2ec   : > { %v2404_v48 = vadd.f32 %v2388_v55, %v2367_v34  ;;  %v2332_v51 = vadd.f32 %v4221_v52, %v2171_v58  ;;  %v2157_v10 = vmul.f32 %v4611_v54, %v2104_v4  ;;  %v2391_v9 = vmul.f32 %v4339_v17, %v2099_v3 }
 0x2ed   : > { %v2426_v5 = vadd.f32 %v4364_v11, %v2405_v32  ;;  %v2370_v27 = vadd.f32 %v2354_v37, %v2333_v8  ;;  %v2174_v6 = vadd.f32 %v2158_v42, %v1917_v22  ;;  %v1921_v53 = vmul.f32 %v4612_v19, %v4305_v20 }
 0x2ee   : > { %v2425_v33 = vadd.f32 %v4364_v11, %v2404_v48  ;;  %v2369_v46 = vadd.f32 %v2353_v62, %v2332_v51  ;;  %v2173_v16 = vadd.f32 %v2157_v10, %v1916_v13  ;;  %v2119_v2 = vpop.permute.xlu0 %2118  ;;  %v2114_v12 = vpop.permute.xlu1 %2113  ;;  %v2360_v37 = vmul.f32 %v4320_v23, %v4305_v20  ;;  %v4615_v13 = vld [vmem:[#allocation19_spill] sm:$0xff] }
 0x2ef   : > { %2442 = vst.msk [vmem:[%s3393_s18 + $0x18] sm:$0xff] %vm1708_vm2, %v2426_v5  ;;  %v2407_v52 = vadd.f32 %v2391_v9, %v2370_v27  ;;  %v2335_v60 = vadd.f32 %v4613_v57, %v2174_v6  ;;  %v2160_v3 = vmul.f32 %v2119_v2, %v4614_v26  ;;  %v2159_v36 = vmul.f32 %v2114_v12, %v4616_v14  ;;  %v4617_v48 = vld [vmem:[#allocation15_spill] sm:$0xff] }
 0x2f0   : > { %2441 = vst.msk [vmem:[%s3393_s18 + $0x10] sm:$0xff] %vm1708_vm2, %v2425_v33  ;;  %v2406_v62 = vadd.f32 %v2390_v43, %v2369_v46  ;;  %v2334_v22 = vadd.f32 %v4615_v13, %v2173_v16  ;;  %v2393_v55 = vmul.f32 %v4339_v17, %v2109_v24  ;;  %v2392_v20 = vmul.f32 %v4339_v17, %v2104_v4  ;;  %v4618_v24 = vld [vmem:[#allocation23_spill] sm:$0xff]  ;;  %v4619_v4 = vld [vmem:[#allocation21_spill] sm:$0xff] }
 0x2f1   : > { %v2428_v18 = vadd.f32 %v4364_v11, %v2407_v52  ;;  %v2372_v34 = vadd.f32 %v4349_v30, %v2335_v60  ;;  %v2176_v58 = vadd.f32 %v2160_v3, %v1919_v39  ;;  %v2175_v8 = vadd.f32 %v2159_v36, %v4354_v29 }
 0x2f2   : > { %v2427_v25 = vadd.f32 %v4364_v11, %v2406_v62  ;;  %v2371_v32 = vadd.f32 %v4343_v45, %v2334_v22  ;;  %v2129_v42 = vpop.permute.xlu0 %2128  ;;  %v1922_v51 = vmul.f32 %v4311_v38, %v4617_v48  ;;  %v2124_v10 = vpop.permute.xlu1 %2123  ;;  %v2361_v5 = vmul.f32 %v4320_v23, %v4311_v38 }
 0x2f3   : > { %2444 = vst.msk [vmem:[%s3393_s18 + $0x28] sm:$0xff] %vm1708_vm2, %v2428_v18  ;;  %v2409_v54 = vadd.f32 %v2393_v55, %v2372_v34  ;;  %v2337_v30 = vadd.f32 %v4259_v28, %v2176_v58  ;;  %v2162_v39 = vmul.f32 %v4618_v24, %v2129_v42  ;;  %v2336_v29 = vadd.f32 %v4253_v15, %v2175_v8  ;;  %v4620_v15 = vld [vmem:[#allocation17_spill] sm:$0xff]  ;;  %v4622_v18 = vld [vmem:[#allocation16_spill] sm:$0xff] }
 0x2f4   : > { %2443 = vst.msk [vmem:[%s3393_s18 + $0x20] sm:$0xff] %vm1708_vm2, %v2427_v25  ;;  %v2408_v45 = vadd.f32 %v2392_v20, %v2371_v32  ;;  %v2161_v9 = vmul.f32 %v4619_v4, %v2124_v10  ;;  %v2395_v28 = vmul.f32 %v4339_v17, %v2119_v2  ;;  %v2394_v38 = vmul.f32 %v4339_v17, %v2114_v12  ;;  %v4623_v25 = vld [vmem:[#allocation12_spill] sm:$0xff] }
 0x2f5   : > { %v2430_v27 = vadd.f32 %v4364_v11, %v2409_v54  ;;  %v2374_v6 = vadd.f32 %v4370_v41, %v2337_v30  ;;  %v2178_v33 = vadd.f32 %v2162_v39, %v1921_v53  ;;  %v2373_v46 = vadd.f32 %v4358_v31, %v2336_v29 }
 0x2f6   : > { %v2429_v43 = vadd.f32 %v4364_v11, %v2408_v45  ;;  %v2177_v16 = vadd.f32 %v2161_v9, %v1920_v50  ;;  %v2139_v19 = vpop.permute.xlu0 %2138  ;;  %v1923_v52 = vmul.f32 %v4309_v63, %v4620_v15  ;;  %v2134_v2 = vpop.permute.xlu1 %2133  ;;  %v2362_v53 = vmul.f32 %v4320_v23, %v4309_v63  ;;  %v4621_v50 = vld [vmem:[#allocation25_spill] sm:$0xff] }
 0x2f7   : > { %2446 = vst.msk [vmem:[%s3393_s18 + $0x38] sm:$0xff] %vm1708_vm2, %v2430_v27  ;;  %v2411_v57 = vadd.f32 %v2395_v28, %v2374_v6  ;;  %v2339_v60 = vadd.f32 %v4256_v47, %v2178_v33  ;;  %v2164_v41 = vmul.f32 %v2139_v19, %v4267_v59  ;;  %v2410_v31 = vadd.f32 %v2394_v38, %v2373_v46 }
 0x2f8   : > { %2445 = vst.msk [vmem:[%s3393_s18 + $0x30] sm:$0xff] %vm1708_vm2, %v2429_v43  ;;  %v2338_v12 = vadd.f32 %v4621_v50, %v2177_v16  ;;  %v2163_v26 = vmul.f32 %v2134_v2, %v4263_v21  ;;  %v2397_v47 = vmul.f32 %v4339_v17, %v2129_v42  ;;  %v2396_v63 = vmul.f32 %v4339_v17, %v2124_v10 }
 0x2f9   : > { %v2432_v3 = vadd.f32 %v4364_v11, %v2411_v57  ;;  %v2376_v62 = vadd.f32 %v2360_v37, %v2339_v60  ;;  %v2180_v13 = vadd.f32 %v2164_v41, %v1923_v52  ;;  %v2431_v59 = vadd.f32 %v4364_v11, %v2410_v31 }
 0x2fa   : > { %v2375_v22 = vadd.f32 %v4386_v44, %v2338_v12  ;;  %v2179_v14 = vadd.f32 %v2163_v26, %v1922_v51  ;;  %v2149_v36 = vpop.permute.xlu0 %2148  ;;  %v1925_v34 = vmul.f32 %v4622_v18, %v4313_v0  ;;  %v2144_v37 = vpop.permute.xlu1 %2143  ;;  %v1924_v32 = vmul.f32 %v4623_v25, %v4315_v35 }
 0x2fb   : > { %2448 = vst.msk [vmem:[%s3393_s18 + $0x48] sm:$0xff] %vm1708_vm2, %v2432_v3  ;;  %v2413_v21 = vadd.f32 %v2397_v47, %v2376_v62  ;;  %v2341_v55 = vadd.f32 %v4277_v49, %v2180_v13  ;;  %v2166_v58 = vmul.f32 %v4265_v56, %v2149_v36  ;;  %2447 = vst.msk [vmem:[%s3393_s18 + $0x40] sm:$0xff] %vm1708_vm2, %v2431_v59 }
 0x2fc   : > { %v2412_v44 = vadd.f32 %v2396_v63, %v2375_v22  ;;  %v2340_v20 = vadd.f32 %v4271_v40, %v2179_v14  ;;  %v2165_v8 = vmul.f32 %v4261_v61, %v2144_v37  ;;  %v2399_v49 = vmul.f32 %v4339_v17, %v2139_v19 }
 0x2fd   : > { %v2434_v42 = vadd.f32 %v4364_v11, %v2413_v21  ;;  %v2378_v48 = vadd.f32 %v2362_v53, %v2341_v55  ;;  %v2182_v51 = vadd.f32 %v2166_v58, %v1925_v34  ;;  %v2398_v54 = vmul.f32 %v4339_v17, %v2134_v2 }
 0x2fe   : > { %v2433_v56 = vadd.f32 %v4364_v11, %v2412_v44  ;;  %v2377_v30 = vadd.f32 %v2361_v5, %v2340_v20  ;;  %v2181_v10 = vadd.f32 %v2165_v8, %v1924_v32  ;;  %v2458_v24 = vpop.permute.xlu0 %2457  ;;  %v2364_v40 = vmul.f32 %v4320_v23, %v4313_v0  ;;  %v2456_v45 = vpop.permute.xlu1 %2455 }
 0x2ff   : > { %2450 = vst.msk [vmem:[%s3393_s18 + $0x58] sm:$0xff] %vm1708_vm2, %v2434_v42  ;;  %v2415_v61 = vadd.f32 %v2399_v49, %v2378_v48  ;;  %v2343_v39 = vadd.f32 %v4274_v1, %v2182_v51  ;;  %v2363_v29 = vmul.f32 %v4320_v23, %v4315_v35  ;;  %v2401_v1 = vmul.f32 %v4339_v17, %v2149_v36 }
 0x300   : > { %2505 = vst.msk [vmem:[%s3398_s10 + $0x8] sm:$0xff] %vm2503_vm4, %v2458_v24  ;;  %v2414_v5 = vadd.f32 %v2398_v54, %v2377_v30  ;;  %v2342_v0 = vadd.f32 %v4269_v7, %v2181_v10  ;;  %2504 = vst.msk [vmem:[%s3398_s10] sm:$0xff] %vm2503_vm4, %v2456_v45  ;;  %v2400_v35 = vmul.f32 %v4339_v17, %v2144_v37 }
 0x301   : > { %2449 = vst.msk [vmem:[%s3393_s18 + $0x50] sm:$0xff] %vm1708_vm2, %v2433_v56  ;;  %v2436_v4 = vadd.f32 %v4364_v11, %v2415_v61  ;;  %v2380_v9 = vadd.f32 %v2364_v40, %v2343_v39 }
 0x302   : > { %v2435_v27 = vadd.f32 %v4364_v11, %v2414_v5  ;;  %v2379_v28 = vadd.f32 %v2363_v29, %v2342_v0  ;;  %v2462_v23 = vpop.permute.xlu0 %2461  ;;  %v2460_v6 = vpop.permute.xlu1 %2459 }
 0x303   : > { %2452 = vst.msk [vmem:[%s3393_s18 + $0x68] sm:$0xff] %vm1708_vm2, %v2436_v4  ;;  %v2417_v7 = vadd.f32 %v2401_v1, %v2380_v9 }
 0x304   : > { %2507 = vst.msk [vmem:[%s3398_s10 + $0x18] sm:$0xff] %vm2503_vm4, %v2462_v23  ;;  %v2416_v33 = vadd.f32 %v2400_v35, %v2379_v28  ;;  %2506 = vst.msk [vmem:[%s3398_s10 + $0x10] sm:$0xff] %vm2503_vm4, %v2460_v6 }
 0x305   : > { %2451 = vst.msk [vmem:[%s3393_s18 + $0x60] sm:$0xff] %vm1708_vm2, %v2435_v27  ;;  %v2438_v43 = vadd.f32 %v4364_v11, %v2417_v7 }
 0x306   : > { %v2437_v17 = vadd.f32 %v4364_v11, %v2416_v33  ;;  %v2466_v38 = vpop.permute.xlu0 %2465  ;;  %v2464_v46 = vpop.permute.xlu1 %2463 }
 0x307   : > { %2454 = vst.msk [vmem:[%s3393_s18 + $0x78] sm:$0xff] %vm1708_vm2, %v2438_v43 }
 0x308   : > { %2509 = vst.msk [vmem:[%s3398_s10 + $0x28] sm:$0xff] %vm2503_vm4, %v2466_v38  ;;  %2508 = vst.msk [vmem:[%s3398_s10 + $0x20] sm:$0xff] %vm2503_vm4, %v2464_v46 }
 0x309   : > { %2453 = vst.msk [vmem:[%s3393_s18 + $0x70] sm:$0xff] %vm1708_vm2, %v2437_v17  ;;  %vm2568_vm2 = vcmask 15368  }
 0x30a   : > { %v2470_v16 = vpop.permute.xlu0 %2469  ;;  %v2468_v19 = vpop.permute.xlu1 %2467 }
 0x30b   : > { %2511 = vst.msk [vmem:[%s3398_s10 + $0x38] sm:$0xff] %vm2503_vm4, %v2470_v16  ;;  %2510 = vst.msk [vmem:[%s3398_s10 + $0x30] sm:$0xff] %vm2503_vm4, %v2468_v19 }
 0x30e   : > { %v2474_v11 = vpop.permute.xlu0 %2473  ;;  %v2472_v15 = vpop.permute.xlu1 %2471 }
 0x30f   : > { %2513 = vst.msk [vmem:[%s3398_s10 + $0x48] sm:$0xff] %vm2503_vm4, %v2474_v11  ;;  %2512 = vst.msk [vmem:[%s3398_s10 + $0x40] sm:$0xff] %vm2503_vm4, %v2472_v15 }
 0x312   : > { %v2478_v52 = vpop.permute.xlu0 %2477  ;;  %v2476_v57 = vpop.permute.xlu1 %2475 }
 0x313   : > { %2515 = vst.msk [vmem:[%s3398_s10 + $0x58] sm:$0xff] %vm2503_vm4, %v2478_v52  ;;  %2514 = vst.msk [vmem:[%s3398_s10 + $0x50] sm:$0xff] %vm2503_vm4, %v2476_v57 }
 0x316   : > { %v2482_v60 = vpop.permute.xlu0 %2481  ;;  %v2480_v2 = vpop.permute.xlu1 %2479 }
 0x317   : > { %2517 = vst.msk [vmem:[%s3398_s10 + $0x68] sm:$0xff] %vm2503_vm4, %v2482_v60  ;;  %2516 = vst.msk [vmem:[%s3398_s10 + $0x60] sm:$0xff] %vm2503_vm4, %v2480_v2 }
 0x31a   : > { %v2486_v41 = vpop.permute.xlu0 %2485  ;;  %v2484_v53 = vpop.permute.xlu1 %2483 }
 0x31b   : > { %2519 = vst.msk [vmem:[%s3398_s10 + $0x78] sm:$0xff] %vm2503_vm4, %v2486_v41  ;;  %2518 = vst.msk [vmem:[%s3398_s10 + $0x70] sm:$0xff] %vm2503_vm4, %v2484_v53 }
 0x31e   : > { %v2523_v31 = vpop.permute.xlu0 %2522  ;;  %v2521_v50 = vpop.permute.xlu1 %2520 }
 0x31f   : > { %2570 = vst.msk [vmem:[%s3398_s10 + $0x8] sm:$0xff] %vm2568_vm2, %v2523_v31  ;;  %2569 = vst.msk [vmem:[%s3398_s10] sm:$0xff] %vm2568_vm2, %v2521_v50 }
 0x322   : > { %v2527_v12 = vpop.permute.xlu0 %2526  ;;  %v2525_v26 = vpop.permute.xlu1 %2524 }
 0x323   : > { %2572 = vst.msk [vmem:[%s3398_s10 + $0x18] sm:$0xff] %vm2568_vm2, %v2527_v12  ;;  %2571 = vst.msk [vmem:[%s3398_s10 + $0x10] sm:$0xff] %vm2568_vm2, %v2525_v26 }
 0x326   : > { %v2531_v3 = vpop.permute.xlu0 %2530  ;;  %v2529_v62 = vpop.permute.xlu1 %2528 }
 0x327   : > { %2574 = vst.msk [vmem:[%s3398_s10 + $0x28] sm:$0xff] %vm2568_vm2, %v2531_v3  ;;  %2573 = vst.msk [vmem:[%s3398_s10 + $0x20] sm:$0xff] %vm2568_vm2, %v2529_v62 }
 0x32a   : > { %v2535_v47 = vpop.permute.xlu0 %2534  ;;  %v2533_v13 = vpop.permute.xlu1 %2532 }
 0x32b   : > { %2576 = vst.msk [vmem:[%s3398_s10 + $0x38] sm:$0xff] %vm2568_vm2, %v2535_v47  ;;  %2575 = vst.msk [vmem:[%s3398_s10 + $0x30] sm:$0xff] %vm2568_vm2, %v2533_v13 }
 0x32e   : > { %v2539_v59 = vpop.permute.xlu0 %2538  ;;  %v2537_v22 = vpop.permute.xlu1 %2536 }
 0x32f   : > { %2578 = vst.msk [vmem:[%s3398_s10 + $0x48] sm:$0xff] %vm2568_vm2, %v2539_v59  ;;  %2577 = vst.msk [vmem:[%s3398_s10 + $0x40] sm:$0xff] %vm2568_vm2, %v2537_v22 }
 0x332   : > { %v2543_v63 = vpop.permute.xlu0 %2542  ;;  %v2541_v14 = vpop.permute.xlu1 %2540 }
 0x333   : > { %2580 = vst.msk [vmem:[%s3398_s10 + $0x58] sm:$0xff] %vm2568_vm2, %v2543_v63  ;;  %2579 = vst.msk [vmem:[%s3398_s10 + $0x50] sm:$0xff] %vm2568_vm2, %v2541_v14 }
 0x336   : > { %v2547_v36 = vpop.permute.xlu0 %2546  ;;  %v2545_v18 = vpop.permute.xlu1 %2544 }
 0x337   : > { %2582 = vst.msk [vmem:[%s3398_s10 + $0x68] sm:$0xff] %vm2568_vm2, %v2547_v36  ;;  %2581 = vst.msk [vmem:[%s3398_s10 + $0x60] sm:$0xff] %vm2568_vm2, %v2545_v18 }
 0x33a   : > { %v2551_v34 = vpop.permute.xlu0 %2550  ;;  %v2549_v21 = vpop.permute.xlu1 %2548 }
 0x33b   : > { %2584 = vst.msk [vmem:[%s3398_s10 + $0x78] sm:$0xff] %vm2568_vm2, %v2551_v34  ;;  %2583 = vst.msk [vmem:[%s3398_s10 + $0x70] sm:$0xff] %vm2568_vm2, %v2549_v21 }
 0x33c PF: > { %s18_s30 = sadd.s32 1, %s3220_s30   ;;  %s4624_s24 = smov %s3200_s25 }
 0x33d   : > { %p15_p13 = scmp.ge.s32.totalorder %s18_s30, 6   ;;  %s4625_s25 = smov %s3326_s15 }
 0x33e   : > { %s4626_s26 = smov %s3212_s28  ;;  %s4627_s27 = smov %s3216_s29 }
 0x33f   : > { %s4628_s28 = smov %s4631_s8  ;;  %s4629_s29 = smov %s4635_s9 }
 0x340   :  { %17 = sbr.rel (!%p15_p13) target bundleno = 4 (0x4), region = 193 }

</bundles_post_ra>
